<compile_context>
chip_gen: v6e
topology: v6e:2x2x1
jax: 0.10.0
libtpu: 0.0.40
codegen_flags: <defaults>
</compile_context>

<pallas_src>
import functools

import jax
import jax.numpy as jnp
from jax import lax
from jax.experimental import pallas as pl
from jax.experimental.pallas import tpu as pltpu


def _sepconv_kernel(x_ref, wd_ref, pw_ref, o_ref, *, K, Wp):
    # x_ref : (1, C, Hp*Wp)   zero-padded input image, spatial flattened on lanes
    # wd_ref: (C, K*K)        depthwise taps, tap index t = dy*K + dx
    # pw_ref: (Cout, C)       pointwise 1x1 weights
    # o_ref : (1, Cout, H_out, W_out)   NCHW output block
    H_out, W_out = o_ref.shape[2], o_ref.shape[3]
    L = (H_out - 1) * Wp + W_out          # padded-stride output length

    wd = wd_ref[...]                       # (C, K*K)

    # Depthwise conv: K*K shifted MACs in padded-stride coordinates.  Column
    # h*Wp + w of `acc` holds the depthwise output at (h, w); the trailing
    # (Wp - W_out) columns of each row are never read back.
    acc = x_ref[0, :, 0:L] * wd[:, 0:1]
    for t in range(1, K * K):
        dy, dx = t // K, t % K
        off = dy * Wp + dx
        acc = acc + x_ref[0, :, off:off + L] * wd[:, t:t + 1]

    # Pointwise 1x1 conv == one MXU matmul over the channel dimension.
    out = jnp.dot(pw_ref[...], acc, preferred_element_type=jnp.float32)  # (Cout, L)

    # Compact the padded-stride rows straight into the NCHW output block.
    for h in range(H_out):
        o_ref[0, :, h, :] = out[:, h * Wp:h * Wp + W_out]


def separable_conv2d(x, depthwise_weight, pointwise_weight, *, padding=1):
    """Fused depthwise(KxK, groups=C) + pointwise(1x1) conv.  NCHW in / NCHW out.

    x                : (N, C, H, W)      float32
    depthwise_weight : (C, 1, K, K)      (PyTorch layout, groups=C, no bias)
    pointwise_weight : (Cout, C, 1, 1)   (PyTorch layout, no bias)
    """
    N, C, H, W = x.shape
    Cd, one, K, K2 = depthwise_weight.shape
    assert Cd == C and one == 1 and K == K2
    Cout, Cp = pointwise_weight.shape[:2]
    assert Cp == C

    Hp, Wp = H + 2 * padding, W + 2 * padding
    H_out, W_out = Hp - K + 1, Wp - K + 1
    S = Hp * Wp

    # Only XLA glue: spatial zero-pad + (free) flatten of the spatial dims.
    x_pad = jnp.pad(x, ((0, 0), (0, 0), (padding, padding), (padding, padding)))
    x_flat = x_pad.reshape(N, C, S).astype(jnp.float32)

    wd = depthwise_weight.reshape(C, K * K).astype(jnp.float32)   # taps on lanes
    pw = pointwise_weight.reshape(Cout, C).astype(jnp.float32)

    kernel = functools.partial(_sepconv_kernel, K=K, Wp=Wp)

    out = pl.pallas_call(
        kernel,
        out_shape=jax.ShapeDtypeStruct((N, Cout, H_out, W_out), jnp.float32),
        grid=(N,),
        in_specs=[
            pl.BlockSpec((1, C, S), lambda n: (n, 0, 0)),          # one image / step
            pl.BlockSpec((C, K * K), lambda n: (0, 0)),            # resident weights
            pl.BlockSpec((Cout, C), lambda n: (0, 0)),             # resident weights
        ],
        out_specs=pl.BlockSpec((1, Cout, H_out, W_out), lambda n: (n, 0, 0, 0)),
        compiler_params=pltpu.CompilerParams(
            dimension_semantics=("parallel",)),                    # megacore on v7x
    )(x_flat, wd, pw)
    return out


def _reference(x, dw, pw, padding=1):
    """Pure-XLA reference: depthwise conv followed by pointwise conv (NCHW)."""
    dn = ("NCHW", "OIHW", "NCHW")
    C = x.shape[1]
    y = lax.conv_general_dilated(
        x, dw, (1, 1), ((padding, padding), (padding, padding)),
        feature_group_count=C, dimension_numbers=dn,
        precision=lax.Precision.HIGHEST)
    return lax.conv_general_dilated(
        y, pw, (1, 1), ((0, 0), (0, 0)), dimension_numbers=dn,
        precision=lax.Precision.HIGHEST)


if __name__ == "__main__":
    key = jax.random.PRNGKey(0)
    kx, kd, kp = jax.random.split(key, 3)

    # Small shapes consistent with the module: batch=2, C_in=4, C_out=8, 16x16.
    N, C, COUT, H, W = 2, 4, 8, 16, 16
    x = jax.random.normal(kx, (N, C, H, W), jnp.float32)
    dw_w = jax.random.normal(kd, (C, 1, 3, 3), jnp.float32) / 3.0
    pw_w = jax.random.normal(kp, (COUT, C, 1, 1), jnp.float32) / jnp.sqrt(C)

    fwd = jax.jit(functools.partial(separable_conv2d, padding=1))
    out = fwd(x, dw_w, pw_w)
    jax.block_until_ready(out)

    assert out.shape == (N, COUT, H, W)
    ref = _reference(x, dw_w, pw_w, padding=1)
    max_err = float(jnp.max(jnp.abs(out - ref)))
    assert jnp.allclose(out, ref, atol=2e-2, rtol=2e-2), max_err
    print("KERNEL_OK")
</pallas_src>

<mosaic_0001>
module attributes {stable_mosaic.version = 11 : i64} {
  func.func @_sepconv_kernel(%arg0: i32, %arg1: memref<1x4x324xf32, #tpu.memory_space<vmem>>, %arg2: memref<4x9xf32, #tpu.memory_space<vmem>>, %arg3: memref<8x4xf32, #tpu.memory_space<vmem>>, %arg4: memref<1x8x16x16xf32, #tpu.memory_space<vmem>>) attributes {dimension_semantics = [#tpu.dimension_semantics<parallel>], iteration_bounds = array<i64: 2>, scalar_prefetch = 0 : i64, scratch_operands = 0 : i64, tpu.core_type = #tpu.core_type<tc>, window_params = [{transform_indices = @transform_0, window_bounds = array<i64: 1, 4, 324>}, {pipeline_mode = #tpu.pipeline_mode<synchronous>, transform_indices = @transform_1, window_bounds = array<i64: 4, 9>}, {pipeline_mode = #tpu.pipeline_mode<synchronous>, transform_indices = @transform_2, window_bounds = array<i64: 8, 4>}, {transform_indices = @transform_3, window_bounds = array<i64: 1, 8, 16, 16>}]} {
    %c0 = arith.constant 0 : index
    %c0_0 = arith.constant 0 : index
    %0 = vector.load %arg2[%c0, %c0_0] : memref<4x9xf32, #tpu.memory_space<vmem>>, vector<4x9xf32>
    %c0_1 = arith.constant 0 : index
    %c0_2 = arith.constant 0 : index
    %c0_3 = arith.constant 0 : index
    %1 = vector.load %arg1[%c0_1, %c0_2, %c0_3] : memref<1x4x324xf32, #tpu.memory_space<vmem>>, vector<1x4x286xf32>
    %2 = vector.shape_cast %1 : vector<1x4x286xf32> to vector<4x286xf32>
    %3 = vector.extract_strided_slice %0 {offsets = [0, 0], sizes = [4, 1], strides = [1, 1]} : vector<4x9xf32> to vector<4x1xf32>
    %4 = vector.broadcast %3 : vector<4x1xf32> to vector<4x286xf32>
    %5 = arith.mulf %2, %4 : vector<4x286xf32>
    %c0_4 = arith.constant 0 : index
    %c0_5 = arith.constant 0 : index
    %c1 = arith.constant 1 : index
    %6 = vector.load %arg1[%c0_4, %c0_5, %c1] : memref<1x4x324xf32, #tpu.memory_space<vmem>>, vector<1x4x286xf32>
    %7 = vector.shape_cast %6 : vector<1x4x286xf32> to vector<4x286xf32>
    %8 = vector.extract_strided_slice %0 {offsets = [0, 1], sizes = [4, 1], strides = [1, 1]} : vector<4x9xf32> to vector<4x1xf32>
    %9 = vector.broadcast %8 : vector<4x1xf32> to vector<4x286xf32>
    %10 = arith.mulf %7, %9 : vector<4x286xf32>
    %11 = arith.addf %5, %10 : vector<4x286xf32>
    %c0_6 = arith.constant 0 : index
    %c0_7 = arith.constant 0 : index
    %c2 = arith.constant 2 : index
    %12 = vector.load %arg1[%c0_6, %c0_7, %c2] : memref<1x4x324xf32, #tpu.memory_space<vmem>>, vector<1x4x286xf32>
    %13 = vector.shape_cast %12 : vector<1x4x286xf32> to vector<4x286xf32>
    %14 = vector.extract_strided_slice %0 {offsets = [0, 2], sizes = [4, 1], strides = [1, 1]} : vector<4x9xf32> to vector<4x1xf32>
    %15 = vector.broadcast %14 : vector<4x1xf32> to vector<4x286xf32>
    %16 = arith.mulf %13, %15 : vector<4x286xf32>
    %17 = arith.addf %11, %16 : vector<4x286xf32>
    %c0_8 = arith.constant 0 : index
    %c0_9 = arith.constant 0 : index
    %c18 = arith.constant 18 : index
    %18 = vector.load %arg1[%c0_8, %c0_9, %c18] : memref<1x4x324xf32, #tpu.memory_space<vmem>>, vector<1x4x286xf32>
    %19 = vector.shape_cast %18 : vector<1x4x286xf32> to vector<4x286xf32>
    %20 = vector.extract_strided_slice %0 {offsets = [0, 3], sizes = [4, 1], strides = [1, 1]} : vector<4x9xf32> to vector<4x1xf32>
    %21 = vector.broadcast %20 : vector<4x1xf32> to vector<4x286xf32>
    %22 = arith.mulf %19, %21 : vector<4x286xf32>
    %23 = arith.addf %17, %22 : vector<4x286xf32>
    %c0_10 = arith.constant 0 : index
    %c0_11 = arith.constant 0 : index
    %c19 = arith.constant 19 : index
    %24 = vector.load %arg1[%c0_10, %c0_11, %c19] : memref<1x4x324xf32, #tpu.memory_space<vmem>>, vector<1x4x286xf32>
    %25 = vector.shape_cast %24 : vector<1x4x286xf32> to vector<4x286xf32>
    %26 = vector.extract_strided_slice %0 {offsets = [0, 4], sizes = [4, 1], strides = [1, 1]} : vector<4x9xf32> to vector<4x1xf32>
    %27 = vector.broadcast %26 : vector<4x1xf32> to vector<4x286xf32>
    %28 = arith.mulf %25, %27 : vector<4x286xf32>
    %29 = arith.addf %23, %28 : vector<4x286xf32>
    %c0_12 = arith.constant 0 : index
    %c0_13 = arith.constant 0 : index
    %c20 = arith.constant 20 : index
    %30 = vector.load %arg1[%c0_12, %c0_13, %c20] : memref<1x4x324xf32, #tpu.memory_space<vmem>>, vector<1x4x286xf32>
    %31 = vector.shape_cast %30 : vector<1x4x286xf32> to vector<4x286xf32>
    %32 = vector.extract_strided_slice %0 {offsets = [0, 5], sizes = [4, 1], strides = [1, 1]} : vector<4x9xf32> to vector<4x1xf32>
    %33 = vector.broadcast %32 : vector<4x1xf32> to vector<4x286xf32>
    %34 = arith.mulf %31, %33 : vector<4x286xf32>
    %35 = arith.addf %29, %34 : vector<4x286xf32>
    %c0_14 = arith.constant 0 : index
    %c0_15 = arith.constant 0 : index
    %c36 = arith.constant 36 : index
    %36 = vector.load %arg1[%c0_14, %c0_15, %c36] : memref<1x4x324xf32, #tpu.memory_space<vmem>>, vector<1x4x286xf32>
    %37 = vector.shape_cast %36 : vector<1x4x286xf32> to vector<4x286xf32>
    %38 = vector.extract_strided_slice %0 {offsets = [0, 6], sizes = [4, 1], strides = [1, 1]} : vector<4x9xf32> to vector<4x1xf32>
    %39 = vector.broadcast %38 : vector<4x1xf32> to vector<4x286xf32>
    %40 = arith.mulf %37, %39 : vector<4x286xf32>
    %41 = arith.addf %35, %40 : vector<4x286xf32>
    %c0_16 = arith.constant 0 : index
    %c0_17 = arith.constant 0 : index
    %c37 = arith.constant 37 : index
    %42 = vector.load %arg1[%c0_16, %c0_17, %c37] : memref<1x4x324xf32, #tpu.memory_space<vmem>>, vector<1x4x286xf32>
    %43 = vector.shape_cast %42 : vector<1x4x286xf32> to vector<4x286xf32>
    %44 = vector.extract_strided_slice %0 {offsets = [0, 7], sizes = [4, 1], strides = [1, 1]} : vector<4x9xf32> to vector<4x1xf32>
    %45 = vector.broadcast %44 : vector<4x1xf32> to vector<4x286xf32>
    %46 = arith.mulf %43, %45 : vector<4x286xf32>
    %47 = arith.addf %41, %46 : vector<4x286xf32>
    %c0_18 = arith.constant 0 : index
    %c0_19 = arith.constant 0 : index
    %c38 = arith.constant 38 : index
    %48 = vector.load %arg1[%c0_18, %c0_19, %c38] : memref<1x4x324xf32, #tpu.memory_space<vmem>>, vector<1x4x286xf32>
    %49 = vector.shape_cast %48 : vector<1x4x286xf32> to vector<4x286xf32>
    %50 = vector.extract_strided_slice %0 {offsets = [0, 8], sizes = [4, 1], strides = [1, 1]} : vector<4x9xf32> to vector<4x1xf32>
    %51 = vector.broadcast %50 : vector<4x1xf32> to vector<4x286xf32>
    %52 = arith.mulf %49, %51 : vector<4x286xf32>
    %53 = arith.addf %47, %52 : vector<4x286xf32>
    %c0_20 = arith.constant 0 : index
    %c0_21 = arith.constant 0 : index
    %54 = vector.load %arg3[%c0_20, %c0_21] : memref<8x4xf32, #tpu.memory_space<vmem>>, vector<8x4xf32>
    %cst = arith.constant dense<0.000000e+00> : vector<8x286xf32>
    %55 = tpu.matmul %54, %53, %cst {dimension_numbers = #tpu.dot_dimension_numbers<[1], [0], [0], [1], [0, 0, 1, 1], [], []>} : vector<8x4xf32>, vector<4x286xf32>, vector<8x286xf32> -> vector<8x286xf32>
    %56 = vector.extract_strided_slice %55 {offsets = [0, 0], sizes = [8, 16], strides = [1, 1]} : vector<8x286xf32> to vector<8x16xf32>
    %c0_22 = arith.constant 0 : index
    %c0_23 = arith.constant 0 : index
    %c0_24 = arith.constant 0 : index
    %c0_25 = arith.constant 0 : index
    %57 = vector.load %arg4[%c0_22, %c0_23, %c0_24, %c0_25] : memref<1x8x16x16xf32, #tpu.memory_space<vmem>>, vector<1x8x1x16xf32>
    %58 = vector.shape_cast %57 : vector<1x8x1x16xf32> to vector<8x16xf32>
    %59 = vector.shape_cast %56 : vector<8x16xf32> to vector<1x8x1x16xf32>
    tpu.vector_store %arg4[%c0_22, %c0_23, %c0_24, %c0_25], %59 {strides = array<i32>} : memref<1x8x16x16xf32, #tpu.memory_space<vmem>>, vector<1x8x1x16xf32>,
    %60 = vector.extract_strided_slice %55 {offsets = [0, 18], sizes = [8, 16], strides = [1, 1]} : vector<8x286xf32> to vector<8x16xf32>
    %c0_26 = arith.constant 0 : index
    %c0_27 = arith.constant 0 : index
    %c1_28 = arith.constant 1 : index
    %c0_29 = arith.constant 0 : index
    %61 = vector.load %arg4[%c0_26, %c0_27, %c1_28, %c0_29] : memref<1x8x16x16xf32, #tpu.memory_space<vmem>>, vector<1x8x1x16xf32>
    %62 = vector.shape_cast %61 : vector<1x8x1x16xf32> to vector<8x16xf32>
    %63 = vector.shape_cast %60 : vector<8x16xf32> to vector<1x8x1x16xf32>
    tpu.vector_store %arg4[%c0_26, %c0_27, %c1_28, %c0_29], %63 {strides = array<i32>} : memref<1x8x16x16xf32, #tpu.memory_space<vmem>>, vector<1x8x1x16xf32>,
    %64 = vector.extract_strided_slice %55 {offsets = [0, 36], sizes = [8, 16], strides = [1, 1]} : vector<8x286xf32> to vector<8x16xf32>
    %c0_30 = arith.constant 0 : index
    %c0_31 = arith.constant 0 : index
    %c2_32 = arith.constant 2 : index
    %c0_33 = arith.constant 0 : index
    %65 = vector.load %arg4[%c0_30, %c0_31, %c2_32, %c0_33] : memref<1x8x16x16xf32, #tpu.memory_space<vmem>>, vector<1x8x1x16xf32>
    %66 = vector.shape_cast %65 : vector<1x8x1x16xf32> to vector<8x16xf32>
    %67 = vector.shape_cast %64 : vector<8x16xf32> to vector<1x8x1x16xf32>
    tpu.vector_store %arg4[%c0_30, %c0_31, %c2_32, %c0_33], %67 {strides = array<i32>} : memref<1x8x16x16xf32, #tpu.memory_space<vmem>>, vector<1x8x1x16xf32>,
    %68 = vector.extract_strided_slice %55 {offsets = [0, 54], sizes = [8, 16], strides = [1, 1]} : vector<8x286xf32> to vector<8x16xf32>
    %c0_34 = arith.constant 0 : index
    %c0_35 = arith.constant 0 : index
    %c3 = arith.constant 3 : index
    %c0_36 = arith.constant 0 : index
    %69 = vector.load %arg4[%c0_34, %c0_35, %c3, %c0_36] : memref<1x8x16x16xf32, #tpu.memory_space<vmem>>, vector<1x8x1x16xf32>
    %70 = vector.shape_cast %69 : vector<1x8x1x16xf32> to vector<8x16xf32>
    %71 = vector.shape_cast %68 : vector<8x16xf32> to vector<1x8x1x16xf32>
    tpu.vector_store %arg4[%c0_34, %c0_35, %c3, %c0_36], %71 {strides = array<i32>} : memref<1x8x16x16xf32, #tpu.memory_space<vmem>>, vector<1x8x1x16xf32>,
    %72 = vector.extract_strided_slice %55 {offsets = [0, 72], sizes = [8, 16], strides = [1, 1]} : vector<8x286xf32> to vector<8x16xf32>
    %c0_37 = arith.constant 0 : index
    %c0_38 = arith.constant 0 : index
    %c4 = arith.constant 4 : index
    %c0_39 = arith.constant 0 : index
    %73 = vector.load %arg4[%c0_37, %c0_38, %c4, %c0_39] : memref<1x8x16x16xf32, #tpu.memory_space<vmem>>, vector<1x8x1x16xf32>
    %74 = vector.shape_cast %73 : vector<1x8x1x16xf32> to vector<8x16xf32>
    %75 = vector.shape_cast %72 : vector<8x16xf32> to vector<1x8x1x16xf32>
    tpu.vector_store %arg4[%c0_37, %c0_38, %c4, %c0_39], %75 {strides = array<i32>} : memref<1x8x16x16xf32, #tpu.memory_space<vmem>>, vector<1x8x1x16xf32>,
    %76 = vector.extract_strided_slice %55 {offsets = [0, 90], sizes = [8, 16], strides = [1, 1]} : vector<8x286xf32> to vector<8x16xf32>
    %c0_40 = arith.constant 0 : index
    %c0_41 = arith.constant 0 : index
    %c5 = arith.constant 5 : index
    %c0_42 = arith.constant 0 : index
    %77 = vector.load %arg4[%c0_40, %c0_41, %c5, %c0_42] : memref<1x8x16x16xf32, #tpu.memory_space<vmem>>, vector<1x8x1x16xf32>
    %78 = vector.shape_cast %77 : vector<1x8x1x16xf32> to vector<8x16xf32>
    %79 = vector.shape_cast %76 : vector<8x16xf32> to vector<1x8x1x16xf32>
    tpu.vector_store %arg4[%c0_40, %c0_41, %c5, %c0_42], %79 {strides = array<i32>} : memref<1x8x16x16xf32, #tpu.memory_space<vmem>>, vector<1x8x1x16xf32>,
    %80 = vector.extract_strided_slice %55 {offsets = [0, 108], sizes = [8, 16], strides = [1, 1]} : vector<8x286xf32> to vector<8x16xf32>
    %c0_43 = arith.constant 0 : index
    %c0_44 = arith.constant 0 : index
    %c6 = arith.constant 6 : index
    %c0_45 = arith.constant 0 : index
    %81 = vector.load %arg4[%c0_43, %c0_44, %c6, %c0_45] : memref<1x8x16x16xf32, #tpu.memory_space<vmem>>, vector<1x8x1x16xf32>
    %82 = vector.shape_cast %81 : vector<1x8x1x16xf32> to vector<8x16xf32>
    %83 = vector.shape_cast %80 : vector<8x16xf32> to vector<1x8x1x16xf32>
    tpu.vector_store %arg4[%c0_43, %c0_44, %c6, %c0_45], %83 {strides = array<i32>} : memref<1x8x16x16xf32, #tpu.memory_space<vmem>>, vector<1x8x1x16xf32>,
    %84 = vector.extract_strided_slice %55 {offsets = [0, 126], sizes = [8, 16], strides = [1, 1]} : vector<8x286xf32> to vector<8x16xf32>
    %c0_46 = arith.constant 0 : index
    %c0_47 = arith.constant 0 : index
    %c7 = arith.constant 7 : index
    %c0_48 = arith.constant 0 : index
    %85 = vector.load %arg4[%c0_46, %c0_47, %c7, %c0_48] : memref<1x8x16x16xf32, #tpu.memory_space<vmem>>, vector<1x8x1x16xf32>
    %86 = vector.shape_cast %85 : vector<1x8x1x16xf32> to vector<8x16xf32>
    %87 = vector.shape_cast %84 : vector<8x16xf32> to vector<1x8x1x16xf32>
    tpu.vector_store %arg4[%c0_46, %c0_47, %c7, %c0_48], %87 {strides = array<i32>} : memref<1x8x16x16xf32, #tpu.memory_space<vmem>>, vector<1x8x1x16xf32>,
    %88 = vector.extract_strided_slice %55 {offsets = [0, 144], sizes = [8, 16], strides = [1, 1]} : vector<8x286xf32> to vector<8x16xf32>
    %c0_49 = arith.constant 0 : index
    %c0_50 = arith.constant 0 : index
    %c8 = arith.constant 8 : index
    %c0_51 = arith.constant 0 : index
    %89 = vector.load %arg4[%c0_49, %c0_50, %c8, %c0_51] : memref<1x8x16x16xf32, #tpu.memory_space<vmem>>, vector<1x8x1x16xf32>
    %90 = vector.shape_cast %89 : vector<1x8x1x16xf32> to vector<8x16xf32>
    %91 = vector.shape_cast %88 : vector<8x16xf32> to vector<1x8x1x16xf32>
    tpu.vector_store %arg4[%c0_49, %c0_50, %c8, %c0_51], %91 {strides = array<i32>} : memref<1x8x16x16xf32, #tpu.memory_space<vmem>>, vector<1x8x1x16xf32>,
    %92 = vector.extract_strided_slice %55 {offsets = [0, 162], sizes = [8, 16], strides = [1, 1]} : vector<8x286xf32> to vector<8x16xf32>
    %c0_52 = arith.constant 0 : index
    %c0_53 = arith.constant 0 : index
    %c9 = arith.constant 9 : index
    %c0_54 = arith.constant 0 : index
    %93 = vector.load %arg4[%c0_52, %c0_53, %c9, %c0_54] : memref<1x8x16x16xf32, #tpu.memory_space<vmem>>, vector<1x8x1x16xf32>
    %94 = vector.shape_cast %93 : vector<1x8x1x16xf32> to vector<8x16xf32>
    %95 = vector.shape_cast %92 : vector<8x16xf32> to vector<1x8x1x16xf32>
    tpu.vector_store %arg4[%c0_52, %c0_53, %c9, %c0_54], %95 {strides = array<i32>} : memref<1x8x16x16xf32, #tpu.memory_space<vmem>>, vector<1x8x1x16xf32>,
    %96 = vector.extract_strided_slice %55 {offsets = [0, 180], sizes = [8, 16], strides = [1, 1]} : vector<8x286xf32> to vector<8x16xf32>
    %c0_55 = arith.constant 0 : index
    %c0_56 = arith.constant 0 : index
    %c10 = arith.constant 10 : index
    %c0_57 = arith.constant 0 : index
    %97 = vector.load %arg4[%c0_55, %c0_56, %c10, %c0_57] : memref<1x8x16x16xf32, #tpu.memory_space<vmem>>, vector<1x8x1x16xf32>
    %98 = vector.shape_cast %97 : vector<1x8x1x16xf32> to vector<8x16xf32>
    %99 = vector.shape_cast %96 : vector<8x16xf32> to vector<1x8x1x16xf32>
    tpu.vector_store %arg4[%c0_55, %c0_56, %c10, %c0_57], %99 {strides = array<i32>} : memref<1x8x16x16xf32, #tpu.memory_space<vmem>>, vector<1x8x1x16xf32>,
    %100 = vector.extract_strided_slice %55 {offsets = [0, 198], sizes = [8, 16], strides = [1, 1]} : vector<8x286xf32> to vector<8x16xf32>
    %c0_58 = arith.constant 0 : index
    %c0_59 = arith.constant 0 : index
    %c11 = arith.constant 11 : index
    %c0_60 = arith.constant 0 : index
    %101 = vector.load %arg4[%c0_58, %c0_59, %c11, %c0_60] : memref<1x8x16x16xf32, #tpu.memory_space<vmem>>, vector<1x8x1x16xf32>
    %102 = vector.shape_cast %101 : vector<1x8x1x16xf32> to vector<8x16xf32>
    %103 = vector.shape_cast %100 : vector<8x16xf32> to vector<1x8x1x16xf32>
    tpu.vector_store %arg4[%c0_58, %c0_59, %c11, %c0_60], %103 {strides = array<i32>} : memref<1x8x16x16xf32, #tpu.memory_space<vmem>>, vector<1x8x1x16xf32>,
    %104 = vector.extract_strided_slice %55 {offsets = [0, 216], sizes = [8, 16], strides = [1, 1]} : vector<8x286xf32> to vector<8x16xf32>
    %c0_61 = arith.constant 0 : index
    %c0_62 = arith.constant 0 : index
    %c12 = arith.constant 12 : index
    %c0_63 = arith.constant 0 : index
    %105 = vector.load %arg4[%c0_61, %c0_62, %c12, %c0_63] : memref<1x8x16x16xf32, #tpu.memory_space<vmem>>, vector<1x8x1x16xf32>
    %106 = vector.shape_cast %105 : vector<1x8x1x16xf32> to vector<8x16xf32>
    %107 = vector.shape_cast %104 : vector<8x16xf32> to vector<1x8x1x16xf32>
    tpu.vector_store %arg4[%c0_61, %c0_62, %c12, %c0_63], %107 {strides = array<i32>} : memref<1x8x16x16xf32, #tpu.memory_space<vmem>>, vector<1x8x1x16xf32>,
    %108 = vector.extract_strided_slice %55 {offsets = [0, 234], sizes = [8, 16], strides = [1, 1]} : vector<8x286xf32> to vector<8x16xf32>
    %c0_64 = arith.constant 0 : index
    %c0_65 = arith.constant 0 : index
    %c13 = arith.constant 13 : index
    %c0_66 = arith.constant 0 : index
    %109 = vector.load %arg4[%c0_64, %c0_65, %c13, %c0_66] : memref<1x8x16x16xf32, #tpu.memory_space<vmem>>, vector<1x8x1x16xf32>
    %110 = vector.shape_cast %109 : vector<1x8x1x16xf32> to vector<8x16xf32>
    %111 = vector.shape_cast %108 : vector<8x16xf32> to vector<1x8x1x16xf32>
    tpu.vector_store %arg4[%c0_64, %c0_65, %c13, %c0_66], %111 {strides = array<i32>} : memref<1x8x16x16xf32, #tpu.memory_space<vmem>>, vector<1x8x1x16xf32>,
    %112 = vector.extract_strided_slice %55 {offsets = [0, 252], sizes = [8, 16], strides = [1, 1]} : vector<8x286xf32> to vector<8x16xf32>
    %c0_67 = arith.constant 0 : index
    %c0_68 = arith.constant 0 : index
    %c14 = arith.constant 14 : index
    %c0_69 = arith.constant 0 : index
    %113 = vector.load %arg4[%c0_67, %c0_68, %c14, %c0_69] : memref<1x8x16x16xf32, #tpu.memory_space<vmem>>, vector<1x8x1x16xf32>
    %114 = vector.shape_cast %113 : vector<1x8x1x16xf32> to vector<8x16xf32>
    %115 = vector.shape_cast %112 : vector<8x16xf32> to vector<1x8x1x16xf32>
    tpu.vector_store %arg4[%c0_67, %c0_68, %c14, %c0_69], %115 {strides = array<i32>} : memref<1x8x16x16xf32, #tpu.memory_space<vmem>>, vector<1x8x1x16xf32>,
    %116 = vector.extract_strided_slice %55 {offsets = [0, 270], sizes = [8, 16], strides = [1, 1]} : vector<8x286xf32> to vector<8x16xf32>
    %c0_70 = arith.constant 0 : index
    %c0_71 = arith.constant 0 : index
    %c15 = arith.constant 15 : index
    %c0_72 = arith.constant 0 : index
    %117 = vector.load %arg4[%c0_70, %c0_71, %c15, %c0_72] : memref<1x8x16x16xf32, #tpu.memory_space<vmem>>, vector<1x8x1x16xf32>
    %118 = vector.shape_cast %117 : vector<1x8x1x16xf32> to vector<8x16xf32>
    %119 = vector.shape_cast %116 : vector<8x16xf32> to vector<1x8x1x16xf32>
    tpu.vector_store %arg4[%c0_70, %c0_71, %c15, %c0_72], %119 {strides = array<i32>} : memref<1x8x16x16xf32, #tpu.memory_space<vmem>>, vector<1x8x1x16xf32>,
    return
  }
  func.func @transform_0(%arg0: i32) -> (i32, i32, i32) {
    %c0_i32 = arith.constant 0 : i32
    %c0_i32_0 = arith.constant 0 : i32
    %c0_i32_1 = arith.constant 0 : i32
    return %arg0, %c0_i32, %c0_i32_0 : i32, i32, i32
  }
  func.func @transform_1(%arg0: i32) -> (i32, i32) {
    %c0_i32 = arith.constant 0 : i32
    %c0_i32_0 = arith.constant 0 : i32
    %c0_i32_1 = arith.constant 0 : i32
    return %c0_i32, %c0_i32_0 : i32, i32
  }
  func.func @transform_2(%arg0: i32) -> (i32, i32) {
    %c0_i32 = arith.constant 0 : i32
    %c0_i32_0 = arith.constant 0 : i32
    %c0_i32_1 = arith.constant 0 : i32
    return %c0_i32, %c0_i32_0 : i32, i32
  }
  func.func @transform_3(%arg0: i32) -> (i32, i32, i32, i32) {
    %c0_i32 = arith.constant 0 : i32
    %c0_i32_0 = arith.constant 0 : i32
    %c0_i32_1 = arith.constant 0 : i32
    %c0_i32_2 = arith.constant 0 : i32
    return %arg0, %c0_i32, %c0_i32_0, %c0_i32_1 : i32, i32, i32, i32
  }
}

</mosaic_0001>

<bundles_post_ra>
// kernel: separable_conv2d.1
= control target key start
LH: loop header
LB: loop body
LE: loop exit
PB: predicated region body
PF: predicated region fallthrough
CT: control target
= control target key end

     0   :  { %8 = vsyncpa [#allocation3], 0  ;;  %s2872_s0 = inlined_call_operand.vmem [shape: f32[2,4,324], index: 0, kind: input, shape index: {}]   ;;  %s2873_s1 = inlined_call_operand.vmem [shape: f32[4,9], index: 1, kind: input, shape index: {}]   ;;  %s2874_s2 = inlined_call_operand.vmem [shape: f32[8,4], index: 2, kind: input, shape index: {}]   ;;  %s2875_s3 = inlined_call_operand.hbm [shape: f32[2,8,16,16], index: 3, kind: output, shape index: {}]  }
   0x1   :  { %10 = vsyncpa [#allocation3 + $0x1], 0  ;;  %s1891_s12 = smov 0   ;;  %s1893_s13 = smov 0  }
   0x2   :  { %s1895_s14 = smov 0   ;;  %s1897_s15 = smov 0  }
   0x3 LB: > { %s1912_s16 = sadd.s32 4294967295, %s1832_s15   ;;  %s1662_s17 = sadd.s32 4294967294, %s1832_s15   ;;  %s1832_s15 = sphi %s1897_s15, %s2888_s15   ;;  %s1828_s14 = sphi %s1895_s14, %s2887_s14   ;;  %s1824_s13 = sphi %s1893_s13, %s2886_s13   ;;  %s1820_s12 = sphi %s1891_s12, %s2885_s12  }
   0x4   : > { %s1916_s18 = sadd.s32 1, %s1832_s15   ;;  %s91_s19 = sadd.s32 1, %s1828_s14 }
   0x5   : > { %s88_s20 = ssub.s32 %s1832_s15, %s1916_s18  ;;  %p101_p0 = scmp.ne.s32.totalorder %s1828_s14, %s1824_s13 }
   0x6   : > { %p89_p1 = scmp.eq.s32.totalorder %s88_s20, 0  ;;  %p102_p2 = scmp.eq.s32.totalorder %s1912_s16, 1 }
   0x7   : > { %p107_p3 = scmp.ne.s32.totalorder %s1824_s13, %s1820_s12  ;;  %p108_p4 = scmp.eq.s32.totalorder %s1662_s17, 1 }
   0x8   : > { %s1927_s21 = scalar_select %p89_p1, %s1828_s14, %s91_s19  }
   0x9   : > { %p1929_p5 = por %p102_p2, %p101_p0  ;;  %p1933_p6 = por %p108_p4, %p107_p3 }
   0xa   : > { %p1665_p7 = scmp.ge.s32.totalorder %s1832_s15, 1  ;;  %p140_p8 = scmp.lt.s32.totalorder %s1832_s15, 3 }
   0xc   : > { %p141_p9 = pnand %p1665_p7, %p140_p8 }
   0xd   : > { %p164_p10 = scmp.lt.s32.totalorder (!%p141_p9), %s1912_s16, 1  ;;  %s1844_s4 = smov (!%p141_p9), 127  }
   0xe   : > { %144 = sbr.rel (%p141_p9) target bundleno = 900 (0x384), region = 32  ;;  %s1845_s5 = smov (!%p141_p9), 126  }
   0xf   : > { %s1846_s6 = smov (!%p141_p9), 110   ;;  %s1847_s7 = smov (!%p141_p9), 109  }
  0x10   : > { %s1848_s8 = smov (!%p141_p9), 108   ;;  %s1850_s9 = smov (!%p141_p9), 92  }
  0x11   : > { %s1852_s10 = smov (!%p141_p9), 91   ;;  %s1853_s11 = smov (!%p141_p9), 90  }
  0x12   : > { %s161_s20 = sand.u32 (!%p141_p9), 1, %s1824_s13   ;;  %s1855_s25 = smov (!%p141_p9), 114  }
  0x13   : > { %v169_v0 = vld [vmem:[%s2873_s1] sm:$0xf]  ;;  %v1834_v1 = vmov 1   ;;  %v1835_v2 = vmov 3   ;;  %v1836_v3 = vmov 2   ;;  %v1837_v4 = vmov 4  }
  0x14   : > { %1762 = vset.pattern.permute.xlu0 %v1834_v1  ;;  %1764 = vset.pattern.permute.xlu1 %v1835_v2  ;;  %v1838_v5 = vmov 5   ;;  %v1839_v6 = vmov 6   ;;  %v1840_v7 = vmov 7   ;;  %v1841_v8 = vmov 0   ;;  %s165_s26 = scalar_select %p164_p10, %s1912_s16, 1 }
  0x15   : > { %187 = vperm.xlu0 %1762, %v169_v0   ;;  %244 = vperm.xlu1 %1764, %v169_v0   ;;  %v1842_v9 = vmov 8   ;;  %v1843_v10 = vmov 839922192   ;;  %v179_v12 = vlaneseq  ;;  %v1849_v49 = vmov 0.0   ;;  %s1666_s24 = sshll.u32 %s161_s20, 7  ;;  %s1857_s28 = smov 56  }
  0x16   : > { %v177_v11 = vunpack.c.l.s4 %v1843_v10  ;;  %s1686_s27 = smul.u32 12, %s165_s26  ;;  %1681 = vmatprep.subr.mxu1 %v1849_v49  ;;  %vm1851_vm0 = vmmov 0   ;;  %489 = vmatprep.mubr.f32.mxu0 %v1849_v49  ;;  %vm207_vm1 = vcmask 1043456   ;;  %vm209_vm2 = vcmask 1039360   ;;  %s2023_s26 = scalar_lea.vmem [#allocation2], %s1666_s24 }
  0x17   : > { %v1944_v14 = vshrl.u32 %v179_v12, 7  ;;  %1683 = vmatprep.mubr.msk.f32.mxu1 %vm1851_vm0, %v1849_v49  ;;  %vm237_vm3 = vcmask 1031168   ;;  %vm265_vm4 = vcmask 900096   ;;  %vm293_vm5 = vcmask 891904   ;;  %s1858_s29 = smov 38   ;;  %s1866_s17 = smov 22  }
  0x18   : > { %v178_v13 = vunpack.c.0.s8 %v177_v11  ;;  %s168_s30 = scalar_lea.vmem %s2872_s0, %s1686_s27  ;;  %vm321_vm6 = vcmask 883712   ;;  %vm349_vm7 = vcmask 752640   ;;  %vm377_vm8 = vcmask 744448   ;;  %s1856_s27 = smov 74  }
  0x19   : > { %1763 = vset.pattern.permute.xlu0 %v1836_v3  ;;  %1765 = vset.pattern.permute.xlu1 %v1837_v4  ;;  %v170_v17 = vld [vmem:[%s168_s30] sm:$0xff]  ;;  %v171_v21 = vld [vmem:[%s168_s30 + $0x8] sm:$0xf]  ;;  %vm415_vm9 = vcmask 31744   ;;  %vm405_vm10 = vcmask 736256   ;;  %vm624_vm11 = vcmask 122880  }
  0x1a   : > { %216 = vperm.xlu0 %1763, %v169_v0   ;;  %272 = vperm.xlu1 %1765, %v169_v0   ;;  %v181_v15 = vsub.s32 %v178_v13, %v1944_v14  ;;  %s1859_s30 = smov 20   ;;  %s1867_s19 = smov 4   ;;  %vm1004_vm12 = vcmask 15360  }
  0x1e   : > { %1766 = vset.pattern.permute.xlu1 %v1838_v5  ;;  %1767 = vset.pattern.permute.xlu0 %v1839_v6 }
  0x1f   : > { %300 = vperm.xlu1 %1766, %v169_v0   ;;  %328 = vperm.xlu0 %1767, %v169_v0  }
  0x23   : > { %1768 = vset.pattern.permute.xlu1 %v1840_v7  ;;  %1770 = vset.pattern.permute.xlu0 %v1841_v8 }
  0x24   : > { %356 = vperm.xlu1 %1768, %v169_v0   ;;  %174 = vperm.xlu0 %1770, %v169_v0  }
  0x28   : > { %1769 = vset.pattern.permute.xlu1 %v1842_v9  ;;  %1771 = vset.pattern.permute.xlu0 %v1842_v9 }
  0x29   : > { %384 = vperm.xlu1 %1769, %v169_v0  }
  0x90   : > { %v188_v16 = vpop.permute.xlu0 %187  ;;  %v245_v18 = vpop.permute.xlu1 %244 }
  0x91   : > { %v195_v19 = vrot.slane %v188_v16, %v181_v15  ;;  %v252_v25 = vrot.slane %v245_v18, %v181_v15 }
  0x93   : > { %v197_v20 = vmul.f32 %v195_v19, %v170_v17  ;;  %v198_v26 = vmul.f32 %v195_v19, %v171_v21  ;;  %v254_v29 = vmul.f32 %v252_v25, %v170_v17  ;;  %v255_v35 = vmul.f32 %v252_v25, %v171_v21 }
  0x95   : > { %201 = vrot.lane.b32.xlu1 %v197_v20, %s1844_s4  ;;  %v217_v22 = vpop.permute.xlu0 %216  ;;  %v273_v23 = vpop.permute.xlu1 %272 }
  0x96   : > { %v224_v24 = vrot.slane %v217_v22, %v181_v15  ;;  %v280_v30 = vrot.slane %v273_v23, %v181_v15 }
  0x98   : > { %v226_v27 = vmul.f32 %v224_v24, %v170_v17  ;;  %v227_v28 = vmul.f32 %v224_v24, %v171_v21  ;;  %v282_v33 = vmul.f32 %v280_v30, %v170_v17  ;;  %v283_v38 = vmul.f32 %v280_v30, %v171_v21 }
  0x99   : > { %203 = vrot.lane.b32.xlu1 %v198_v26, %s1844_s4  ;;  %s1860_s4 = smov 112  }
  0x9a   : > { %230 = vrot.lane.b32.xlu0 %v226_v27, %s1845_s5  ;;  %v301_v31 = vpop.permute.xlu1 %300  ;;  %v329_v32 = vpop.permute.xlu0 %328 }
  0x9b   : > { %v308_v34 = vrot.slane %v301_v31, %v181_v15  ;;  %v336_v41 = vrot.slane %v329_v32, %v181_v15 }
  0x9d   : > { %232 = vrot.lane.b32.xlu1 %v227_v28, %s1845_s5  ;;  %v310_v40 = vmul.f32 %v308_v34, %v170_v17  ;;  %v311_v44 = vmul.f32 %v308_v34, %v171_v21  ;;  %v338_v45 = vmul.f32 %v336_v41, %v170_v17  ;;  %v339_v48 = vmul.f32 %v336_v41, %v171_v21  ;;  %s1861_s5 = smov 94  }
  0x9e   : > { %258 = vrot.lane.b32.xlu0 %v254_v29, %s1846_s6 }
  0x9f   : > { %v175_v36 = vpop.permute.xlu0 %174  ;;  %v357_v39 = vpop.permute.xlu1 %356 }
  0xa0   : > { %v182_v37 = vrot.slane %v175_v36, %v181_v15  ;;  %v364_v46 = vrot.slane %v357_v39, %v181_v15 }
  0xa1   : > { %260 = vrot.lane.b32.xlu1 %v255_v35, %s1846_s6 }
  0xa2   : > { %286 = vrot.lane.b32.xlu0 %v282_v33, %s1847_s7  ;;  %v1952_v42 = vmul.f32 %v182_v37, %v170_v17  ;;  %v185_v43 = vmul.f32 %v182_v37, %v171_v21  ;;  %v366_v50 = vmul.f32 %v364_v46, %v170_v17  ;;  %v367_v52 = vmul.f32 %v364_v46, %v171_v21 }
  0xa4   : > { %v385_v47 = vpop.permute.xlu1 %384 }
  0xa5   : > { %288 = vrot.lane.b32.xlu1 %v283_v38, %s1847_s7  ;;  %v392_v51 = vrot.slane %v385_v47, %v181_v15  ;;  %s1862_s7 = smov 2  }
  0xa6   : > { %314 = vrot.lane.b32.xlu0 %v310_v40, %s1848_s8 }
  0xa7   : > { %v394_v53 = vmul.f32 %v392_v51, %v170_v17  ;;  %v395_v54 = vmul.f32 %v392_v51, %v171_v21  ;;  %v411_v51 = vld [vmem:[%s2874_s2] sm:$0xff] }
  0xa9   : > { %316 = vrot.lane.b32.xlu1 %v311_v44, %s1848_s8  ;;  %s1863_s8 = smov 76  }
  0xaa   : > { %342 = vrot.lane.b32.xlu0 %v338_v45, %s1850_s9 }
  0xad   : > { %344 = vrot.lane.b32.xlu1 %v339_v48, %s1850_s9 }
  0xae   : > { %370 = vrot.lane.b32.xlu0 %v366_v50, %s1852_s10 }
  0xb1   : > { %372 = vrot.lane.b32.xlu1 %v367_v52, %s1852_s10  ;;  %s1864_s10 = smov 58  }
  0xb2   : > { %398 = vrot.lane.b32.xlu0 %v394_v53, %s1853_s11 }
  0xb5   : > { %400 = vrot.lane.b32.xlu1 %v395_v54, %s1853_s11  ;;  %s1865_s11 = smov 40  }
 0x107   : > { %v202_v55 = vpop.permute.xlu1 %201 }
 0x108   : > { %v205_v63 = vrot.slane %v202_v55, 4 }
 0x10b   : > { %v204_v56 = vpop.permute.xlu1 %203 }
 0x10c   : > { %v231_v57 = vpop.permute.xlu0 %230  ;;  %v206_v61 = vrot.slane %v204_v56, 4  ;;  %v214_v6 = vadd.f32 %v204_v56, %v185_v43 }
 0x10d   : > { %v234_v0 = vrot.slane %v231_v57, 4 }
 0x10e   : > { %v208_v3 = vsel %vm207_vm1, %v205_v63, %v206_v61  ;;  %v1979_v63 = vsub.s32 0, %v1944_v14 }
 0x10f   : > { %v233_v58 = vpop.permute.xlu1 %232  ;;  %v210_v11 = vsel %vm209_vm2, %v202_v55, %v208_v3 }
 0x110   : > { %v259_v59 = vpop.permute.xlu0 %258  ;;  %v235_v1 = vrot.slane %v233_v58, 4  ;;  %v242_v13 = vadd.f32 %v233_v58, %v214_v6  ;;  %v213_v20 = vadd.f32 %v210_v11, %v1952_v42  ;;  %v1854_v58 = vmov 1966171168  }
 0x111   : > { %v262_v8 = vrot.slane %v259_v59, 4 }
 0x112   : > { %v236_v7 = vsel %vm207_vm1, %v234_v0, %v235_v1 }
 0x113   : > { %v261_v60 = vpop.permute.xlu1 %260  ;;  %v238_v19 = vsel %vm237_vm3, %v231_v57, %v236_v7 }
 0x114   : > { %v287_v62 = vpop.permute.xlu0 %286  ;;  %v263_v4 = vrot.slane %v261_v60, 4  ;;  %v270_v21 = vadd.f32 %v261_v60, %v242_v13  ;;  %v241_v26 = vadd.f32 %v238_v19, %v213_v20 }
 0x115   : > { %v290_v9 = vrot.slane %v287_v62, 4 }
 0x116   : > { %v264_v15 = vsel %vm207_vm1, %v262_v8, %v263_v4 }
 0x117   : > { %v289_v2 = vpop.permute.xlu1 %288  ;;  %v266_v24 = vsel %vm265_vm4, %v259_v59, %v264_v15  ;;  %v569_v59 = vunpack.c.l.s4 %v1854_v58 }
 0x118   : > { %v315_v5 = vpop.permute.xlu0 %314  ;;  %v291_v10 = vrot.slane %v289_v2, 4  ;;  %v298_v27 = vadd.f32 %v289_v2, %v270_v21  ;;  %v269_v32 = vadd.f32 %v266_v24, %v241_v26 }
 0x119   : > { %v318_v16 = vrot.slane %v315_v5, 4  ;;  %v570_v60 = vunpack.c.0.s8 %v569_v59 }
 0x11a   : > { %v292_v22 = vsel %vm207_vm1, %v290_v9, %v291_v10 }
 0x11b   : > { %v317_v12 = vpop.permute.xlu1 %316  ;;  %v294_v31 = vsel %vm293_vm5, %v287_v62, %v292_v22  ;;  %v1974_v61 = vsub.s32 %v570_v60, %v1944_v14 }
 0x11c   : > { %v319_v17 = vrot.slane %v317_v12, 4  ;;  %v343_v18 = vpop.permute.xlu0 %342  ;;  %v326_v33 = vadd.f32 %v317_v12, %v298_v27  ;;  %v297_v38 = vadd.f32 %v294_v31, %v269_v32 }
 0x11d   : > { %v346_v23 = vrot.slane %v343_v18, 4 }
 0x11e   : > { %v320_v28 = vsel %vm207_vm1, %v318_v16, %v319_v17  ;;  %v2004_v16 = vsub.s32 1, %v1944_v14 }
 0x11f   : > { %v345_v25 = vpop.permute.xlu1 %344  ;;  %v322_v36 = vsel %vm321_vm6, %v315_v5, %v320_v28 }
 0x120   : > { %v347_v29 = vrot.slane %v345_v25, 4  ;;  %v371_v30 = vpop.permute.xlu0 %370  ;;  %v354_v39 = vadd.f32 %v345_v25, %v326_v33  ;;  %v325_v46 = vadd.f32 %v322_v36, %v297_v38 }
 0x121   : > { %v374_v35 = vrot.slane %v371_v30, 4 }
 0x122   : > { %v348_v34 = vsel %vm207_vm1, %v346_v23, %v347_v29 }
 0x123   : > { %v373_v37 = vpop.permute.xlu1 %372  ;;  %v350_v42 = vsel %vm349_vm7, %v343_v18, %v348_v34 }
 0x124   : > { %v375_v40 = vrot.slane %v373_v37, 4  ;;  %v399_v41 = vpop.permute.xlu0 %398  ;;  %v382_v44 = vadd.f32 %v373_v37, %v354_v39  ;;  %v353_v52 = vadd.f32 %v350_v42, %v325_v46 }
 0x125   : > { %v402_v45 = vrot.slane %v399_v41, 4 }
 0x126   : > { %v376_v43 = vsel %vm207_vm1, %v374_v35, %v375_v40 }
 0x127   : > { %v401_v47 = vpop.permute.xlu1 %400  ;;  %v378_v48 = vsel %vm377_vm8, %v371_v30, %v376_v43 }
 0x128   : > { %v403_v49 = vrot.slane %v401_v47, 4  ;;  %v410_v50 = vadd.f32 %v401_v47, %v382_v44  ;;  %v381_v53 = vadd.f32 %v378_v48, %v353_v52 }
 0x12a   : > { %1682 = vmatpush3.msk.msra.mxu1 %vm207_vm1, %v410_v50  ;;  %v404_v54 = vsel %vm207_vm1, %v402_v45, %v403_v49 }
 0x12b   : > { %1684 = vmatmul.mubr.msk.f32.vlgmr.msra.gmra.mxu1 %vm415_vm9, %v411_v51  ;;  %v406_v55 = vsel %vm405_vm10, %v399_v41, %v404_v54 }
 0x12c   : > { %v409_v56 = vadd.f32 %v406_v55, %v381_v53 }
 0x12e   : > { %v414_v57 = vcombine.high %v409_v56, %v409_v56 }
 0x130   : > { %1668 = vmatprep.subr.msk.mxu0 %vm207_vm1, %v414_v57 }
 0x131   : > { %1669 = vmatpush1.msk.msra.mxu0 %vm207_vm1, %v409_v56 }
 0x132   : > { %1670 = vmatmul.mubr.msk.f32.vlgmr.msra.gmra.mxu0 %vm415_vm9, %v411_v51 }
 0x1eb   : > { %v1976_v62 = vpop.f32.mrf.mxu1 }
 0x1ec   : > { %v1473_v0 = vcombine.high %v1976_v62, %v1976_v62  ;;  %v1480_v1 = vrot.slane %v1976_v62, %v1974_v61 }
 0x1ed   : > { %v1685_v2 = vpop.f32.mrf.mxu1 }
 0x1ee   : > { %v1487_v3 = vrot.slane %v1473_v0, %v1974_v61  ;;  %v1488_v4 = vcombine.high %v1480_v1, %v1480_v1  ;;  %v1496_v5 = vrot.slane %v1480_v1, %v1974_v61 }
 0x1f0   : > { %v1525_v6 = vrot.slane %v1496_v5, %v1979_v63  ;;  %v1510_v7 = vrot.slane %v1488_v4, %v1974_v61  ;;  %v1518_v8 = vcombine.high %v1496_v5, %v1496_v5  ;;  %v1993_v9 = vrot.slane %v1487_v3, %v1974_v61 }
 0x1f1   : > { %v1489_v18 = vcombine.high %v1487_v3, %v1487_v3 }
 0x1f2   : > { %1554 = vrot.lane.b32.xlu0 %v1525_v6, %s1855_s25  ;;  %v1996_v10 = vpop.f32.mrf.mxu0  ;;  %v1529_v11 = vrot.slane %v1510_v7, %v1979_v63  ;;  %v1520_v12 = vcombine.high %v1510_v7, %v1510_v7  ;;  %v1533_v17 = vrot.slane %v1518_v8, %v1979_v63  ;;  %v1541_v23 = vrot.slane %v1993_v9, %v1979_v63 }
 0x1f3   : > { %v567_v13 = vcombine.high %v1996_v10, %v1996_v10  ;;  %v574_v15 = vrot.slane %v1996_v10, %v1974_v61  ;;  %v1519_v26 = vcombine.high %v1993_v9, %v1993_v9  ;;  %v2031_v34 = vrot.slane %v1489_v18, %v1974_v61 }
 0x1f4   : > { %1556 = vrot.lane.b32.xlu1 %v1529_v11, %s1855_s25  ;;  %v493_v22 = vpop.f32.mrf.mxu0  ;;  %v1537_v14 = vrot.slane %v1520_v12, %v1979_v63 }
 0x1f5   : > { %v581_v19 = vrot.slane %v567_v13, %v1974_v61  ;;  %v582_v20 = vcombine.high %v574_v15, %v574_v15  ;;  %v590_v21 = vrot.slane %v574_v15, %v1974_v61  ;;  %v1029_v24 = vcombine.high %v493_v22, %v493_v22 }
 0x1f6   : > { %v1036_v25 = vrot.slane %v493_v22, %v1974_v61  ;;  %1558 = vrot.lane.b32.xlu0 %v1533_v17, %s1855_s25  ;;  %v858_v38 = vcombine.low %v1996_v10, %v493_v22  ;;  %v859_v40 = vcombine.high %v1996_v10, %v493_v22  ;;  %v1303_v46 = vcombine.low %v493_v22, %v1976_v62 }
 0x1f7   : > { %v583_v27 = vcombine.high %v581_v19, %v581_v19  ;;  %v2018_v28 = vrot.slane %v581_v19, %v1974_v61  ;;  %v604_v29 = vrot.slane %v582_v20, %v1974_v61  ;;  %v2021_v30 = vcombine.high %v590_v21, %v590_v21  ;;  %625 = vst.msk [vmem:[%s2023_s26] sm:$0x1] %vm624_vm11, %v590_v21 }
 0x1f8   : > { %v1043_v31 = vrot.slane %v1029_v24, %v1974_v61  ;;  %v1044_v32 = vcombine.high %v1036_v25, %v1036_v25  ;;  %v1052_v33 = vrot.slane %v1036_v25, %v1974_v61  ;;  %1560 = vrot.lane.b32.xlu1 %v1537_v14, %s1855_s25  ;;  %v2050_v39 = vrot.slane %v590_v21, %v1979_v63 }
 0x1f9   : > { %v2034_v35 = vrot.slane %v583_v27, %v1974_v61  ;;  %v613_v36 = vcombine.high %v2018_v28, %v2018_v28  ;;  %v2038_v37 = vcombine.high %v604_v29, %v604_v29  ;;  %626 = vst.msk [vmem:[%s2023_s26 + $0x10] sm:$0x1] %vm624_vm11, %v604_v29  ;;  %627 = vst.msk [vmem:[%s2023_s26 + $0x20] sm:$0x1] %vm624_vm11, %v2021_v30 }
 0x1fa   : > { %629 = vst.msk [vmem:[%s2023_s26 + $0x40] sm:$0x1] %vm624_vm11, %v2018_v28  ;;  %v1045_v41 = vcombine.high %v1043_v31, %v1043_v31  ;;  %v1059_v42 = vrot.slane %v1043_v31, %v1974_v61  ;;  %1562 = vrot.lane.b32.xlu0 %v1541_v23, %s1855_s25  ;;  %v2066_v44 = vrot.slane %v604_v29, %v1979_v63 }
 0x1fb   : > { %v615_v43 = vcombine.high %v2034_v35, %v2034_v35  ;;  %628 = vst.msk [vmem:[%s2023_s26 + $0x30] sm:$0x1] %vm624_vm11, %v2038_v37  ;;  %630 = vst.msk [vmem:[%s2023_s26 + $0x50] sm:$0x1] %vm624_vm11, %v2034_v35  ;;  %v2069_v45 = vrot.slane %v613_v36, %v1979_v63  ;;  %v1066_v47 = vrot.slane %v1044_v32, %v1974_v61 }
 0x1fc   : > { %631 = vst.msk [vmem:[%s2023_s26 + $0x60] sm:$0x1] %vm624_vm11, %v613_v36  ;;  %v1073_v48 = vrot.slane %v1045_v41, %v1974_v61  ;;  %v1074_v49 = vcombine.high %v1052_v33, %v1052_v33  ;;  %v1075_v50 = vcombine.high %v1059_v42, %v1059_v42  ;;  %v2077_v51 = vrot.slane %v1052_v33, %v1979_v63 }
 0x1fd   : > { %632 = vst.msk [vmem:[%s2023_s26 + $0x70] sm:$0x1] %vm624_vm11, %v615_v43  ;;  %v2080_v52 = vrot.slane %v1059_v42, %v1979_v63  ;;  %v1304_v53 = vcombine.high %v493_v22, %v1976_v62  ;;  %v1545_v54 = vrot.slane %v2031_v34, %v1979_v63  ;;  %v1076_v55 = vcombine.high %v1066_v47, %v1066_v47 }
 0x1fe   : > { %v1077_v56 = vcombine.high %v1073_v48, %v1073_v48  ;;  %v2086_v57 = vrot.slane %v1066_v47, %v1979_v63  ;;  %v2089_v58 = vrot.slane %v1074_v49, %v1979_v63  ;;  %665 = vrot.lane.b32.xlu0 %v2050_v39, %s1846_s6  ;;  %v2094_v59 = vrot.slane %v1073_v48, %v1979_v63 }
 0x1ff   : > { %v2097_v60 = vrot.slane %v1075_v50, %v1979_v63  ;;  %1564 = vrot.lane.b32.xlu1 %v1545_v54, %s1855_s25  ;;  %v1521_v62 = vcombine.high %v2031_v34, %v2031_v34  ;;  %v866_v0 = vrot.slane %v858_v38, %v1974_v61  ;;  %v2104_v1 = vrot.slane %v1076_v55, %v1979_v63 }
 0x200   : > { %v873_v2 = vrot.slane %v859_v40, %v1974_v61  ;;  %v1311_v3 = vrot.slane %v1303_v46, %v1974_v61  ;;  %v1318_v4 = vrot.slane %v1304_v53, %v1974_v61  ;;  %v2113_v7 = vrot.slane %v615_v43, %v1979_v63 }
 0x201   : > { %v2110_v5 = vrot.slane %v866_v0, %v1974_v61  ;;  %v874_v6 = vcombine.high %v866_v0, %v866_v0  ;;  %v2116_v8 = vrot.slane %v1077_v56, %v1979_v63  ;;  %v648_v34 = vrot.slane %v2038_v37, %v1979_v63 }
 0x202   : > { %697 = vrot.lane.b32.xlu0 %v2050_v39, %s1850_s9  ;;  %v875_v10 = vcombine.high %v873_v2, %v873_v2  ;;  %v2121_v11 = vrot.slane %v873_v2, %v1974_v61  ;;  %v1319_v12 = vcombine.high %v1311_v3, %v1311_v3  ;;  %v2124_v13 = vrot.slane %v1311_v3, %v1974_v61 }
 0x203   : > { %667 = vrot.lane.b32.xlu1 %v2066_v44, %s1846_s6  ;;  %v915_v15 = vrot.slane %v2110_v5, %v2004_v16  ;;  %v1320_v17 = vcombine.high %v1318_v4, %v1318_v4  ;;  %v2131_v18 = vrot.slane %v1318_v4, %v1974_v61  ;;  %v911_v19 = vrot.slane %v2110_v5, %v1979_v63 }
 0x204   : > { %v947_v20 = vrot.slane %v2121_v11, %v2004_v16  ;;  %v1360_v21 = vrot.slane %v2124_v13, %v2004_v16  ;;  %v943_v22 = vrot.slane %v2121_v11, %v1979_v63  ;;  %v2142_v23 = vrot.slane %v874_v6, %v1974_v61 }
 0x205   : > { %v1392_v24 = vrot.slane %v2131_v18, %v2004_v16  ;;  %v2148_v25 = vcombine.high %v2110_v5, %v2110_v5  ;;  %v2151_v14 = vrot.slane %v875_v10, %v1974_v61  ;;  %v2155_v27 = vcombine.high %v2121_v11, %v2121_v11 }
 0x206   : > { %729 = vrot.lane.b32.xlu0 %v2050_v39, %s1856_s27  ;;  %v923_v29 = vrot.slane %v2142_v23, %v2004_v16  ;;  %v1356_v31 = vrot.slane %v2124_v13, %v1979_v63  ;;  %v1388_v32 = vrot.slane %v2131_v18, %v1979_v63  ;;  %v919_v33 = vrot.slane %v2142_v23, %v1979_v63 }
 0x207   : > { %699 = vrot.lane.b32.xlu1 %v2066_v44, %s1850_s9  ;;  %v931_v36 = vrot.slane %v2148_v25, %v2004_v16  ;;  %v955_v38 = vrot.slane %v2151_v14, %v2004_v16  ;;  %v963_v40 = vrot.slane %v2155_v27, %v2004_v16  ;;  %v927_v41 = vrot.slane %v2148_v25, %v1979_v63 }
 0x208   : > { %v951_v42 = vrot.slane %v2151_v14, %v1979_v63  ;;  %v2180_v43 = vrot.slane %v1319_v12, %v1974_v61  ;;  %v959_v46 = vrot.slane %v2155_v27, %v1979_v63  ;;  %v2186_v47 = vcombine.high %v2124_v13, %v2124_v13 }
 0x209   : > { %v2189_v48 = vrot.slane %v1320_v17, %v1974_v61  ;;  %v2193_v49 = vcombine.high %v2131_v18, %v2131_v18  ;;  %v2197_v50 = vcombine.high %v2142_v23, %v2142_v23  ;;  %v2201_v53 = vcombine.high %v2151_v14, %v2151_v14 }
 0x20a   : > { %761 = vrot.lane.b32.xlu0 %v2050_v39, %s1857_s28  ;;  %v1368_v61 = vrot.slane %v2180_v43, %v2004_v16  ;;  %v1376_v54 = vrot.slane %v2186_v47, %v2004_v16  ;;  %v1364_v55 = vrot.slane %v2180_v43, %v1979_v63  ;;  %v2233_v56 = vcombine.high %v2180_v43, %v2180_v43 }
 0x20b   : > { %731 = vrot.lane.b32.xlu1 %v2066_v44, %s1856_s27  ;;  %v1400_v0 = vrot.slane %v2189_v48, %v2004_v16  ;;  %v1408_v2 = vrot.slane %v2193_v49, %v2004_v16  ;;  %v971_v4 = vrot.slane %v2201_v53, %v2004_v16  ;;  %v1404_v10 = vrot.slane %v2193_v49, %v1979_v63 }
 0x20c   : > { %v2237_v3 = vcombine.high %v2189_v48, %v2189_v48  ;;  %v2243_v6 = vrot.slane %v1519_v26, %v1979_v63  ;;  %v2249_v12 = vrot.slane %v1521_v62, %v1979_v63  ;;  %v1384_v17 = vrot.slane %v2233_v56, %v2004_v16 }
 0x20d   : > { %v1380_v9 = vrot.slane %v2233_v56, %v1979_v63  ;;  %v644_v62 = vrot.slane %v2021_v30, %v1979_v63  ;;  %v652_v26 = vrot.slane %v2018_v28, %v1979_v63 }
 0x20e   : > { %793 = vrot.lane.b32.xlu0 %v2050_v39, %s1858_s29 }
 0x20f   : > { %763 = vrot.lane.b32.xlu1 %v2066_v44, %s1857_s28 }
 0x212   : > { %825 = vrot.lane.b32.xlu0 %v2050_v39, %s1859_s30  ;;  %v656_v39 = vrot.slane %v2034_v35, %v1979_v63 }
 0x213   : > { %795 = vrot.lane.b32.xlu1 %v2066_v44, %s1858_s29 }
 0x216   : > { %669 = vrot.lane.b32.xlu0 %v644_v62, %s1846_s6 }
 0x217   : > { %827 = vrot.lane.b32.xlu1 %v2066_v44, %s1859_s30 }
 0x21a   : > { %673 = vrot.lane.b32.xlu0 %v652_v26, %s1846_s6 }
 0x21b   : > { %671 = vrot.lane.b32.xlu1 %v648_v34, %s1846_s6 }
 0x21e   : > { %701 = vrot.lane.b32.xlu0 %v644_v62, %s1850_s9 }
 0x21f   : > { %675 = vrot.lane.b32.xlu1 %v656_v39, %s1846_s6 }
 0x222   : > { %705 = vrot.lane.b32.xlu0 %v652_v26, %s1850_s9 }
 0x223   : > { %703 = vrot.lane.b32.xlu1 %v648_v34, %s1850_s9 }
 0x226   : > { %733 = vrot.lane.b32.xlu0 %v644_v62, %s1856_s27 }
 0x227   : > { %707 = vrot.lane.b32.xlu1 %v656_v39, %s1850_s9 }
 0x22a   : > { %737 = vrot.lane.b32.xlu0 %v652_v26, %s1856_s27 }
 0x22b   : > { %735 = vrot.lane.b32.xlu1 %v648_v34, %s1856_s27 }
 0x22e   : > { %765 = vrot.lane.b32.xlu0 %v644_v62, %s1857_s28 }
 0x22f   : > { %739 = vrot.lane.b32.xlu1 %v656_v39, %s1856_s27 }
 0x232   : > { %769 = vrot.lane.b32.xlu0 %v652_v26, %s1857_s28 }
 0x233   : > { %767 = vrot.lane.b32.xlu1 %v648_v34, %s1857_s28 }
 0x236   : > { %797 = vrot.lane.b32.xlu0 %v644_v62, %s1858_s29 }
 0x237   : > { %771 = vrot.lane.b32.xlu1 %v656_v39, %s1857_s28 }
 0x23a   : > { %801 = vrot.lane.b32.xlu0 %v652_v26, %s1858_s29 }
 0x23b   : > { %799 = vrot.lane.b32.xlu1 %v648_v34, %s1858_s29 }
 0x23e   : > { %829 = vrot.lane.b32.xlu0 %v644_v62, %s1859_s30 }
 0x23f   : > { %803 = vrot.lane.b32.xlu1 %v656_v39, %s1858_s29 }
 0x242   : > { %833 = vrot.lane.b32.xlu0 %v652_v26, %s1859_s30 }
 0x243   : > { %831 = vrot.lane.b32.xlu1 %v648_v34, %s1859_s30 }
 0x246   : > { %1110 = vrot.lane.b32.xlu0 %v2077_v51, %s1860_s4 }
 0x247   : > { %835 = vrot.lane.b32.xlu1 %v656_v39, %s1859_s30 }
 0x24a   : > { %1142 = vrot.lane.b32.xlu0 %v2077_v51, %s1861_s5 }
 0x24b   : > { %974 = vrot.lane.b32.xlu1 %v915_v15, %s1862_s7 }
 0x24e   : > { %1174 = vrot.lane.b32.xlu0 %v2077_v51, %s1863_s8 }
 0x24f   : > { %990 = vrot.lane.b32.xlu1 %v947_v20, %s1862_s7 }
 0x252   : > { %1206 = vrot.lane.b32.xlu0 %v2077_v51, %s1864_s10 }
 0x253   : > { %1112 = vrot.lane.b32.xlu1 %v2086_v57, %s1860_s4 }
 0x256   : > { %1238 = vrot.lane.b32.xlu0 %v2077_v51, %s1865_s11 }
 0x257   : > { %1144 = vrot.lane.b32.xlu1 %v2086_v57, %s1861_s5 }
 0x25a   : > { %1270 = vrot.lane.b32.xlu0 %v2077_v51, %s1866_s17 }
 0x25b   : > { %1176 = vrot.lane.b32.xlu1 %v2086_v57, %s1863_s8 }
 0x25e   : > { %677 = vrot.lane.b32.xlu0 %v2069_v45, %s1846_s6 }
 0x25f   : > { %1208 = vrot.lane.b32.xlu1 %v2086_v57, %s1864_s10 }
 0x262   : > { %709 = vrot.lane.b32.xlu0 %v2069_v45, %s1850_s9 }
 0x263   : > { %1240 = vrot.lane.b32.xlu1 %v2086_v57, %s1865_s11 }
 0x264   : > { %v1555_v28 = vpop.permute.xlu0 %1554 }
 0x265   : > { %1578 = vst.msk [vmem:[%s2023_s26 + $0xf] sm:$0x1] %vm624_vm11, %v1555_v28 }
 0x266   : > { %v1557_v30 = vpop.permute.xlu1 %1556  ;;  %741 = vrot.lane.b32.xlu0 %v2069_v45, %s1856_s27 }
 0x267   : > { %1272 = vrot.lane.b32.xlu1 %v2086_v57, %s1866_s17  ;;  %1579 = vst.msk [vmem:[%s2023_s26 + $0x1f] sm:$0x1] %vm624_vm11, %v1557_v30 }
 0x268   : > { %v1559_v35 = vpop.permute.xlu0 %1558 }
 0x269   : > { %1580 = vst.msk [vmem:[%s2023_s26 + $0x2f] sm:$0x1] %vm624_vm11, %v1559_v35 }
 0x26a   : > { %v1561_v37 = vpop.permute.xlu1 %1560  ;;  %773 = vrot.lane.b32.xlu0 %v2069_v45, %s1857_s28 }
 0x26b   : > { %1419 = vrot.lane.b32.xlu1 %v1360_v21, %s1867_s19  ;;  %1581 = vst.msk [vmem:[%s2023_s26 + $0x3f] sm:$0x1] %vm624_vm11, %v1561_v37 }
 0x26c   : > { %v1563_v44 = vpop.permute.xlu0 %1562 }
 0x26d   : > { %1582 = vst.msk [vmem:[%s2023_s26 + $0x4f] sm:$0x1] %vm624_vm11, %v1563_v44 }
 0x26e   : > { %805 = vrot.lane.b32.xlu0 %v2069_v45, %s1858_s29 }
 0x26f   : > { %1435 = vrot.lane.b32.xlu1 %v1392_v24, %s1867_s19 }
 0x270   : > { %v666_v51 = vpop.permute.xlu0 %665 }
 0x271   : > { %v1565_v57 = vpop.permute.xlu1 %1564  ;;  %689 = vst.msk [vmem:[%s2023_s26 + $0x1] sm:$0x1] %vm624_vm11, %v666_v51 }
 0x272   : > { %1583 = vst.msk [vmem:[%s2023_s26 + $0x5f] sm:$0x1] %vm624_vm11, %v1565_v57  ;;  %837 = vrot.lane.b32.xlu0 %v2069_v45, %s1859_s30 }
 0x273   : > { %679 = vrot.lane.b32.xlu1 %v2113_v7, %s1846_s6  ;;  %s1678_s6 = sshll.u32 %s1912_s16, 11  ;;  %s2832_s16 = scalar_lea.sflag [#allocation3], %s161_s20 }
 0x274   : > { %v698_v15 = vpop.permute.xlu0 %697 }
 0x275   : > { %v668_v20 = vpop.permute.xlu1 %667  ;;  %721 = vst.msk [vmem:[%s2023_s26 + $0x2] sm:$0x1] %vm624_vm11, %v698_v15 }
 0x276   : > { %690 = vst.msk [vmem:[%s2023_s26 + $0x11] sm:$0x1] %vm624_vm11, %v668_v20  ;;  %972 = vrot.lane.b32.xlu0 %v911_v19, %s1862_s7 }
 0x277   : > { %711 = vrot.lane.b32.xlu1 %v2113_v7, %s1850_s9  ;;  %s1600_s9 = sshll.u32 %s2023_s26, 4  ;;  %s2826_s9 = int_to_ptr.vmem [resolvable:$true] %s1600_s9 }
 0x278   : > { %v730_v45 = vpop.permute.xlu0 %729 }
 0x279   : > { %v700_v21 = vpop.permute.xlu1 %699  ;;  %753 = vst.msk [vmem:[%s2023_s26 + $0x3] sm:$0x1] %vm624_vm11, %v730_v45 }
 0x27a   : > { %722 = vst.msk [vmem:[%s2023_s26 + $0x12] sm:$0x1] %vm624_vm11, %v700_v21  ;;  %988 = vrot.lane.b32.xlu0 %v943_v22, %s1862_s7 }
 0x27b   : > { %743 = vrot.lane.b32.xlu1 %v2113_v7, %s1856_s27  ;;  %s2824_s27 = scalar_lea.hbm %s2875_s3, %s1678_s6 }
 0x27c   : > { %v762_v5 = vpop.permute.xlu0 %761 }
 0x27d   : > { %v732_v19 = vpop.permute.xlu1 %731  ;;  %785 = vst.msk [vmem:[%s2023_s26 + $0x4] sm:$0x1] %vm624_vm11, %v762_v5 }
 0x27e   : > { %754 = vst.msk [vmem:[%s2023_s26 + $0x13] sm:$0x1] %vm624_vm11, %v732_v19  ;;  %1114 = vrot.lane.b32.xlu0 %v2089_v58, %s1860_s4 }
 0x27f   : > { %775 = vrot.lane.b32.xlu1 %v2113_v7, %s1857_s28  ;;  %s1772_s28 = scalar_lea.vmem %s2826_s9, 2048 }
 0x280   : > { %v794_v11 = vpop.permute.xlu0 %793  ;;  %p1773_p11 = scmp.ne.s32.totalorder %s2826_s9, %s1772_s28 }
 0x281   : > { %v764_v22 = vpop.permute.xlu1 %763  ;;  %817 = vst.msk [vmem:[%s2023_s26 + $0x5] sm:$0x1] %vm624_vm11, %v794_v11 }
 0x282   : > { %786 = vst.msk [vmem:[%s2023_s26 + $0x14] sm:$0x1] %vm624_vm11, %v764_v22  ;;  %1118 = vrot.lane.b32.xlu0 %v2080_v52, %s1860_s4  ;;  %p1774_p12 = pnand %p1773_p11, %p1929_p5 }
 0x283   : > { %807 = vrot.lane.b32.xlu1 %v2113_v7, %s1858_s29  ;;  %s1868_s29 = smov [#allocation2]  }
 0x284   : > { %v826_v24 = vpop.permute.xlu0 %825  ;;  %p1775_p13 = pneg %p1774_p12 }
 0x285   : > { %v796_v26 = vpop.permute.xlu1 %795  ;;  %849 = vst.msk [vmem:[%s2023_s26 + $0x6] sm:$0x1] %vm624_vm11, %v826_v24 }
 0x286   : > { %818 = vst.msk [vmem:[%s2023_s26 + $0x15] sm:$0x1] %vm624_vm11, %v796_v26  ;;  %1146 = vrot.lane.b32.xlu0 %v2089_v58, %s1861_s5 }
 0x287   : > { %839 = vrot.lane.b32.xlu1 %v2113_v7, %s1859_s30  ;;  %s1776_s30 = sshll.u32 %s1868_s29, 4  ;;  %s1777_s30 = int_to_ptr.vmem [resolvable:$false] %s1776_s30 }
 0x288   : > { %v670_v34 = vpop.permute.xlu0 %669  ;;  %p1779_p0 = scmp.lt.s32.totalorder %s2826_s9, %s1777_s30 }
 0x289   : > { %v828_v62 = vpop.permute.xlu1 %827  ;;  %691 = vst.msk [vmem:[%s2023_s26 + $0x21] sm:$0x1] %vm624_vm11, %v670_v34  ;;  %v2879_v34 = vrot.slane %v2186_v47, %v1979_v63 }
 0x28a   : > { %850 = vst.msk [vmem:[%s2023_s26 + $0x16] sm:$0x1] %vm624_vm11, %v828_v62  ;;  %1150 = vrot.lane.b32.xlu0 %v2080_v52, %s1861_s5  ;;  %v2880_v62 = vrot.slane %v2189_v48, %v1979_v63 }
 0x28b   : > { %978 = vrot.lane.b32.xlu1 %v923_v29, %s1862_s7 }
 0x28c   : > { %v674_v39 = vpop.permute.xlu0 %673 }
 0x28d   : > { %v672_v28 = vpop.permute.xlu1 %671  ;;  %693 = vst.msk [vmem:[%s2023_s26 + $0x41] sm:$0x1] %vm624_vm11, %v674_v39 }
 0x28e   : > { %692 = vst.msk [vmem:[%s2023_s26 + $0x31] sm:$0x1] %vm624_vm11, %v672_v28  ;;  %1178 = vrot.lane.b32.xlu0 %v2089_v58, %s1863_s8 }
 0x28f   : > { %982 = vrot.lane.b32.xlu1 %v931_v36, %s1862_s7 }
 0x290   : > { %v702_v7 = vpop.permute.xlu0 %701 }
 0x291   : > { %v676_v30 = vpop.permute.xlu1 %675  ;;  %723 = vst.msk [vmem:[%s2023_s26 + $0x22] sm:$0x1] %vm624_vm11, %v702_v7 }
 0x292   : > { %694 = vst.msk [vmem:[%s2023_s26 + $0x51] sm:$0x1] %vm624_vm11, %v676_v30  ;;  %1182 = vrot.lane.b32.xlu0 %v2080_v52, %s1863_s8  ;;  %v2881_v30 = vrot.slane %v2197_v50, %v1979_v63 }
 0x293   : > { %994 = vrot.lane.b32.xlu1 %v955_v38, %s1862_s7 }
 0x294   : > { %v706_v29 = vpop.permute.xlu0 %705 }
 0x295   : > { %v704_v35 = vpop.permute.xlu1 %703  ;;  %725 = vst.msk [vmem:[%s2023_s26 + $0x42] sm:$0x1] %vm624_vm11, %v706_v29 }
 0x296   : > { %724 = vst.msk [vmem:[%s2023_s26 + $0x32] sm:$0x1] %vm624_vm11, %v704_v35  ;;  %1210 = vrot.lane.b32.xlu0 %v2089_v58, %s1864_s10  ;;  %v2882_v35 = vrot.slane %v2201_v53, %v1979_v63 }
 0x297   : > { %998 = vrot.lane.b32.xlu1 %v963_v40, %s1862_s7 }
 0x298   : > { %v734_v36 = vpop.permute.xlu0 %733 }
 0x299   : > { %v708_v37 = vpop.permute.xlu1 %707  ;;  %755 = vst.msk [vmem:[%s2023_s26 + $0x23] sm:$0x1] %vm624_vm11, %v734_v36 }
 0x29a   : > { %726 = vst.msk [vmem:[%s2023_s26 + $0x52] sm:$0x1] %vm624_vm11, %v708_v37  ;;  %1214 = vrot.lane.b32.xlu0 %v2080_v52, %s1864_s10 }
 0x29b   : > { %1116 = vrot.lane.b32.xlu1 %v2104_v1, %s1860_s4 }
 0x29c   : > { %v738_v38 = vpop.permute.xlu0 %737 }
 0x29d   : > { %v736_v44 = vpop.permute.xlu1 %735  ;;  %757 = vst.msk [vmem:[%s2023_s26 + $0x43] sm:$0x1] %vm624_vm11, %v738_v38  ;;  %v2883_v38 = vrot.slane %v2237_v3, %v1979_v63 }
 0x29e   : > { %756 = vst.msk [vmem:[%s2023_s26 + $0x33] sm:$0x1] %vm624_vm11, %v736_v44  ;;  %1242 = vrot.lane.b32.xlu0 %v2089_v58, %s1865_s11 }
 0x29f   : > { %1120 = vrot.lane.b32.xlu1 %v2094_v59, %s1860_s4 }
 0x2a0   : > { %v766_v40 = vpop.permute.xlu0 %765 }
 0x2a1   : > { %v740_v51 = vpop.permute.xlu1 %739  ;;  %787 = vst.msk [vmem:[%s2023_s26 + $0x24] sm:$0x1] %vm624_vm11, %v766_v40 }
 0x2a2   : > { %758 = vst.msk [vmem:[%s2023_s26 + $0x53] sm:$0x1] %vm624_vm11, %v740_v51  ;;  %1246 = vrot.lane.b32.xlu0 %v2080_v52, %s1865_s11 }
 0x2a3   : > { %1148 = vrot.lane.b32.xlu1 %v2104_v1, %s1861_s5 }
 0x2a4   : > { %v770_v57 = vpop.permute.xlu0 %769 }
 0x2a5   : > { %v768_v15 = vpop.permute.xlu1 %767  ;;  %789 = vst.msk [vmem:[%s2023_s26 + $0x44] sm:$0x1] %vm624_vm11, %v770_v57 }
 0x2a6   : > { %788 = vst.msk [vmem:[%s2023_s26 + $0x34] sm:$0x1] %vm624_vm11, %v768_v15  ;;  %1417 = vrot.lane.b32.xlu0 %v1356_v31, %s1867_s19 }
 0x2a7   : > { %1152 = vrot.lane.b32.xlu1 %v2094_v59, %s1861_s5 }
 0x2a8   : > { %v798_v20 = vpop.permute.xlu0 %797 }
 0x2a9   : > { %v772_v45 = vpop.permute.xlu1 %771  ;;  %819 = vst.msk [vmem:[%s2023_s26 + $0x25] sm:$0x1] %vm624_vm11, %v798_v20 }
 0x2aa   : > { %790 = vst.msk [vmem:[%s2023_s26 + $0x54] sm:$0x1] %vm624_vm11, %v772_v45  ;;  %1433 = vrot.lane.b32.xlu0 %v1388_v32, %s1867_s19 }
 0x2ab   : > { %1180 = vrot.lane.b32.xlu1 %v2104_v1, %s1863_s8 }
 0x2ac   : > { %v802_v13 = vpop.permute.xlu0 %801 }
 0x2ad   : > { %v800_v31 = vpop.permute.xlu1 %799  ;;  %821 = vst.msk [vmem:[%s2023_s26 + $0x45] sm:$0x1] %vm624_vm11, %v802_v13 }
 0x2ae   : > { %820 = vst.msk [vmem:[%s2023_s26 + $0x35] sm:$0x1] %vm624_vm11, %v800_v31  ;;  %1274 = vrot.lane.b32.xlu0 %v2089_v58, %s1866_s17 }
 0x2af   : > { %1184 = vrot.lane.b32.xlu1 %v2094_v59, %s1863_s8 }
 0x2b0   : > { %v830_v18 = vpop.permute.xlu0 %829 }
 0x2b1   : > { %v804_v32 = vpop.permute.xlu1 %803  ;;  %851 = vst.msk [vmem:[%s2023_s26 + $0x26] sm:$0x1] %vm624_vm11, %v830_v18 }
 0x2b2   : > { %822 = vst.msk [vmem:[%s2023_s26 + $0x55] sm:$0x1] %vm624_vm11, %v804_v32  ;;  %1278 = vrot.lane.b32.xlu0 %v2080_v52, %s1866_s17 }
 0x2b3   : > { %1212 = vrot.lane.b32.xlu1 %v2104_v1, %s1864_s10 }
 0x2b4   : > { %v834_v21 = vpop.permute.xlu0 %833 }
 0x2b5   : > { %v832_v58 = vpop.permute.xlu1 %831  ;;  %853 = vst.msk [vmem:[%s2023_s26 + $0x46] sm:$0x1] %vm624_vm11, %v834_v21 }
 0x2b6   : > { %852 = vst.msk [vmem:[%s2023_s26 + $0x36] sm:$0x1] %vm624_vm11, %v832_v58  ;;  %976 = vrot.lane.b32.xlu0 %v919_v33, %s1862_s7 }
 0x2b7   : > { %1216 = vrot.lane.b32.xlu1 %v2094_v59, %s1864_s10 }
 0x2b8   : > { %v1111_v52 = vpop.permute.xlu0 %1110 }
 0x2b9   : > { %v836_v5 = vpop.permute.xlu1 %835  ;;  %1134 = vst.msk [vmem:[%s2023_s26 + $0x8] sm:$0x1] %vm624_vm11, %v1111_v52 }
 0x2ba   : > { %854 = vst.msk [vmem:[%s2023_s26 + $0x56] sm:$0x1] %vm624_vm11, %v836_v5  ;;  %980 = vrot.lane.b32.xlu0 %v927_v41, %s1862_s7 }
 0x2bb   : > { %1244 = vrot.lane.b32.xlu1 %v2104_v1, %s1865_s11 }
 0x2bc   : > { %v1143_v23 = vpop.permute.xlu0 %1142 }
 0x2bd   : > { %v2533_v33 = vpop.permute.xlu1 %974  ;;  %1166 = vst.msk [vmem:[%s2023_s26 + $0x9] sm:$0x1] %vm624_vm11, %v1143_v23 }
 0x2be   : > { %992 = vrot.lane.b32.xlu0 %v951_v42, %s1862_s7 }
 0x2bf   : > { %1248 = vrot.lane.b32.xlu1 %v2094_v59, %s1865_s11 }
 0x2c0   : > { %v1175_v25 = vpop.permute.xlu0 %1174 }
 0x2c1   : > { %v2543_v41 = vpop.permute.xlu1 %990  ;;  %1198 = vst.msk [vmem:[%s2023_s26 + $0xa] sm:$0x1] %vm624_vm11, %v1175_v25 }
 0x2c2   : > { %996 = vrot.lane.b32.xlu0 %v959_v46, %s1862_s7 }
 0x2c3   : > { %1423 = vrot.lane.b32.xlu1 %v1368_v61, %s1867_s19 }
 0x2c4   : > { %v1207_v14 = vpop.permute.xlu0 %1206 }
 0x2c5   : > { %v1113_v42 = vpop.permute.xlu1 %1112  ;;  %1230 = vst.msk [vmem:[%s2023_s26 + $0xb] sm:$0x1] %vm624_vm11, %v1207_v14 }
 0x2c6   : > { %1135 = vst.msk [vmem:[%s2023_s26 + $0x18] sm:$0x1] %vm624_vm11, %v1113_v42  ;;  %1122 = vrot.lane.b32.xlu0 %v2097_v60, %s1860_s4 }
 0x2c7   : > { %1427 = vrot.lane.b32.xlu1 %v1376_v54, %s1867_s19 }
 0x2c8   : > { %v1239_v27 = vpop.permute.xlu0 %1238 }
 0x2c9   : > { %v1145_v46 = vpop.permute.xlu1 %1144  ;;  %1262 = vst.msk [vmem:[%s2023_s26 + $0xc] sm:$0x1] %vm624_vm11, %v1239_v27 }
 0x2ca   : > { %1167 = vst.msk [vmem:[%s2023_s26 + $0x19] sm:$0x1] %vm624_vm11, %v1145_v46  ;;  %1154 = vrot.lane.b32.xlu0 %v2097_v60, %s1861_s5 }
 0x2cb   : > { %1439 = vrot.lane.b32.xlu1 %v1400_v0, %s1867_s19 }
 0x2cc   : > { %v1271_v61 = vpop.permute.xlu0 %1270 }
 0x2cd   : > { %v1177_v19 = vpop.permute.xlu1 %1176  ;;  %1294 = vst.msk [vmem:[%s2023_s26 + $0xd] sm:$0x1] %vm624_vm11, %v1271_v61 }
 0x2ce   : > { %1199 = vst.msk [vmem:[%s2023_s26 + $0x1a] sm:$0x1] %vm624_vm11, %v1177_v19  ;;  %1186 = vrot.lane.b32.xlu0 %v2097_v60, %s1863_s8 }
 0x2cf   : > { %1443 = vrot.lane.b32.xlu1 %v1408_v2, %s1867_s19 }
 0x2d0   : > { %v678_v54 = vpop.permute.xlu0 %677 }
 0x2d1   : > { %v1209_v11 = vpop.permute.xlu1 %1208  ;;  %695 = vst.msk [vmem:[%s2023_s26 + $0x61] sm:$0x1] %vm624_vm11, %v678_v54 }
 0x2d2   : > { %1231 = vst.msk [vmem:[%s2023_s26 + $0x1b] sm:$0x1] %vm624_vm11, %v1209_v11  ;;  %1218 = vrot.lane.b32.xlu0 %v2097_v60, %s1864_s10 }
 0x2d3   : > { %1276 = vrot.lane.b32.xlu1 %v2104_v1, %s1866_s17  ;;  %v2878_v1 = vrot.slane %v2197_v50, %v2004_v16 }
 0x2d4   : > { %v710_v0 = vpop.permute.xlu0 %709 }
 0x2d5   : > { %v1241_v22 = vpop.permute.xlu1 %1240  ;;  %727 = vst.msk [vmem:[%s2023_s26 + $0x62] sm:$0x1] %vm624_vm11, %v710_v0 }
 0x2d6   : > { %1263 = vst.msk [vmem:[%s2023_s26 + $0x1c] sm:$0x1] %vm624_vm11, %v1241_v22  ;;  %1250 = vrot.lane.b32.xlu0 %v2097_v60, %s1865_s11 }
 0x2d7   : > { %1280 = vrot.lane.b32.xlu1 %v2094_v59, %s1866_s17 }
 0x2d8   : > { %v742_v2 = vpop.permute.xlu0 %741 }
 0x2d9   : > { %v1273_v24 = vpop.permute.xlu1 %1272  ;;  %759 = vst.msk [vmem:[%s2023_s26 + $0x63] sm:$0x1] %vm624_vm11, %v742_v2 }
 0x2da   : > { %1295 = vst.msk [vmem:[%s2023_s26 + $0x1d] sm:$0x1] %vm624_vm11, %v1273_v24  ;;  %1421 = vrot.lane.b32.xlu0 %v1364_v55, %s1867_s19 }
 0x2db   : > { %986 = vrot.lane.b32.xlu1 %v2878_v1, %s1862_s7 }
 0x2dc   : > { %v774_v26 = vpop.permute.xlu0 %773 }
 0x2dd   : > { %v2613_v59 = vpop.permute.xlu1 %1419  ;;  %791 = vst.msk [vmem:[%s2023_s26 + $0x64] sm:$0x1] %vm624_vm11, %v774_v26 }
 0x2de   : > { %1425 = vrot.lane.b32.xlu0 %v2879_v34, %s1867_s19 }
 0x2df   : > { %1002 = vrot.lane.b32.xlu1 %v971_v4, %s1862_s7 }
 0x2e0   : > { %v806_v43 = vpop.permute.xlu0 %805 }
 0x2e1   : > { %v2625_v55 = vpop.permute.xlu1 %1435  ;;  %823 = vst.msk [vmem:[%s2023_s26 + $0x65] sm:$0x1] %vm624_vm11, %v806_v43 }
 0x2e2   : > { %1437 = vrot.lane.b32.xlu0 %v2880_v62, %s1867_s19 }
 0x2e3   : > { %1124 = vrot.lane.b32.xlu1 %v2116_v8, %s1860_s4  ;;  %s1778_s4 = scalar_lea.vmem %s1777_s30, 4096 }
 0x2e4   : > { %v838_v47 = vpop.permute.xlu0 %837  ;;  %p1780_p1 = scmp.lt.s32.totalorder %s1778_s4, %s1772_s28 }
 0x2e5   : > { %v680_v39 = vpop.permute.xlu1 %679  ;;  %855 = vst.msk [vmem:[%s2023_s26 + $0x66] sm:$0x1] %vm624_vm11, %v838_v47 }
 0x2e6   : > { %696 = vst.msk [vmem:[%s2023_s26 + $0x71] sm:$0x1] %vm624_vm11, %v680_v39  ;;  %1441 = vrot.lane.b32.xlu0 %v1404_v10, %s1867_s19  ;;  %p1781_p2 = por %p1780_p1, %p1779_p0 }
 0x2e7   : > { %1156 = vrot.lane.b32.xlu1 %v2116_v8, %s1861_s5 }
 0x2e8   : > { %v973_v48 = vpop.permute.xlu0 %972  ;;  %p1782_p3 = pnand %p1781_p2, %p1775_p13 }
 0x2e9   : > { %v712_v4 = vpop.permute.xlu1 %711  ;;  %v1005_v28 = vsel %vm1004_vm12, %v973_v48, %v2533_v33 }
 0x2ea   : > { %728 = vst.msk [vmem:[%s2023_s26 + $0x72] sm:$0x1] %vm624_vm11, %v712_v4  ;;  %1021 = vst.msk [vmem:[%s2023_s26 + $0x7] sm:$0x1] %vm624_vm11, %v1005_v28  ;;  %1282 = vrot.lane.b32.xlu0 %v2097_v60, %s1866_s17 }
 0x2eb   : > { %1188 = vrot.lane.b32.xlu1 %v2116_v8, %s1863_s8 }
 0x2ec   : > { %v989_v49 = vpop.permute.xlu0 %988 }
 0x2ed   : > { %v744_v10 = vpop.permute.xlu1 %743  ;;  %v1009_v7 = vsel %vm1004_vm12, %v989_v49, %v2543_v41 }
 0x2ee   : > { %760 = vst.msk [vmem:[%s2023_s26 + $0x73] sm:$0x1] %vm624_vm11, %v744_v10  ;;  %1025 = vst.msk [vmem:[%s2023_s26 + $0x47] sm:$0x1] %vm624_vm11, %v1009_v7  ;;  %984 = vrot.lane.b32.xlu0 %v2881_v30, %s1862_s7 }
 0x2ef   : > { %1220 = vrot.lane.b32.xlu1 %v2116_v8, %s1864_s10 }
 0x2f0   : > { %v1115_v60 = vpop.permute.xlu0 %1114 }
 0x2f1   : > { %v776_v29 = vpop.permute.xlu1 %775  ;;  %1136 = vst.msk [vmem:[%s2023_s26 + $0x28] sm:$0x1] %vm624_vm11, %v1115_v60 }
 0x2f2   : > { %792 = vst.msk [vmem:[%s2023_s26 + $0x74] sm:$0x1] %vm624_vm11, %v776_v29  ;;  %1000 = vrot.lane.b32.xlu0 %v2882_v35, %s1862_s7 }
 0x2f3   : > { %1252 = vrot.lane.b32.xlu1 %v2116_v8, %s1865_s11 }
 0x2f4   : > { %v1119_v50 = vpop.permute.xlu0 %1118 }
 0x2f5   : > { %v808_v36 = vpop.permute.xlu1 %807  ;;  %1138 = vst.msk [vmem:[%s2023_s26 + $0x48] sm:$0x1] %vm624_vm11, %v1119_v50 }
 0x2f6   : > { %824 = vst.msk [vmem:[%s2023_s26 + $0x75] sm:$0x1] %vm624_vm11, %v808_v36  ;;  %1429 = vrot.lane.b32.xlu0 %v1380_v9, %s1867_s19  ;;  %v2884_v9 = vrot.slane %v2237_v3, %v2004_v16 }
 0x2f7   : > { %1431 = vrot.lane.b32.xlu1 %v1384_v17, %s1867_s19 }
 0x2f8   : > { %v1147_v53 = vpop.permute.xlu0 %1146 }
 0x2f9   : > { %v840_v37 = vpop.permute.xlu1 %839  ;;  %1168 = vst.msk [vmem:[%s2023_s26 + $0x29] sm:$0x1] %vm624_vm11, %v1147_v53 }
 0x2fa   : > { %856 = vst.msk [vmem:[%s2023_s26 + $0x76] sm:$0x1] %vm624_vm11, %v840_v37  ;;  %1445 = vrot.lane.b32.xlu0 %v2883_v38, %s1867_s19 }
 0x2fb   : > { %1447 = vrot.lane.b32.xlu1 %v2884_v9, %s1867_s19 }
 0x2fc   : > { %v1151_v56 = vpop.permute.xlu0 %1150 }
 0x2fd   : > { %v979_v17 = vpop.permute.xlu1 %978  ;;  %1170 = vst.msk [vmem:[%s2023_s26 + $0x49] sm:$0x1] %vm624_vm11, %v1151_v56 }
 0x2fe   : > { %1566 = vrot.lane.b32.xlu0 %v2243_v6, %s1855_s25 }
 0x2ff   : > { %1284 = vrot.lane.b32.xlu1 %v2116_v8, %s1866_s17 }
 0x300   : > { %v1179_v63 = vpop.permute.xlu0 %1178 }
 0x301   : > { %v983_v44 = vpop.permute.xlu1 %982  ;;  %1200 = vst.msk [vmem:[%s2023_s26 + $0x2a] sm:$0x1] %vm624_vm11, %v1179_v63 }
 0x303   : > { %1568 = vrot.lane.b32.xlu1 %v2249_v12, %s1855_s25 }
 0x304   : > { %v1183_v16 = vpop.permute.xlu0 %1182 }
 0x305   : > { %v995_v3 = vpop.permute.xlu1 %994  ;;  %1202 = vst.msk [vmem:[%s2023_s26 + $0x4a] sm:$0x1] %vm624_vm11, %v1183_v16 }
 0x308   : > { %v1211_v40 = vpop.permute.xlu0 %1210 }
 0x309   : > { %v999_v6 = vpop.permute.xlu1 %998  ;;  %1232 = vst.msk [vmem:[%s2023_s26 + $0x2b] sm:$0x1] %vm624_vm11, %v1211_v40 }
 0x30c   : > { %v1215_v8 = vpop.permute.xlu0 %1214 }
 0x30d   : > { %v1117_v51 = vpop.permute.xlu1 %1116  ;;  %1234 = vst.msk [vmem:[%s2023_s26 + $0x4b] sm:$0x1] %vm624_vm11, %v1215_v8 }
 0x30e   : > { %1137 = vst.msk [vmem:[%s2023_s26 + $0x38] sm:$0x1] %vm624_vm11, %v1117_v51 }
 0x310   : > { %v1243_v57 = vpop.permute.xlu0 %1242 }
 0x311   : > { %v1121_v12 = vpop.permute.xlu1 %1120  ;;  %1264 = vst.msk [vmem:[%s2023_s26 + $0x2c] sm:$0x1] %vm624_vm11, %v1243_v57 }
 0x312   : > { %1139 = vst.msk [vmem:[%s2023_s26 + $0x58] sm:$0x1] %vm624_vm11, %v1121_v12 }
 0x314   : > { %v1247_v15 = vpop.permute.xlu0 %1246 }
 0x315   : > { %v1149_v20 = vpop.permute.xlu1 %1148  ;;  %1266 = vst.msk [vmem:[%s2023_s26 + $0x4c] sm:$0x1] %vm624_vm11, %v1247_v15 }
 0x316   : > { %1169 = vst.msk [vmem:[%s2023_s26 + $0x39] sm:$0x1] %vm624_vm11, %v1149_v20 }
 0x318   : > { %v1418_v45 = vpop.permute.xlu0 %1417 }
 0x319   : > { %v1153_v13 = vpop.permute.xlu1 %1152  ;;  %v1449_v31 = vsel %vm415_vm9, %v1418_v45, %v2613_v59 }
 0x31a   : > { %1171 = vst.msk [vmem:[%s2023_s26 + $0x59] sm:$0x1] %vm624_vm11, %v1153_v13  ;;  %1465 = vst.msk [vmem:[%s2023_s26 + $0xe] sm:$0x1] %vm624_vm11, %v1449_v31 }
 0x31c   : > { %v1434_v18 = vpop.permute.xlu0 %1433 }
 0x31d   : > { %v1181_v32 = vpop.permute.xlu1 %1180  ;;  %v1453_v21 = vsel %vm415_vm9, %v1434_v18, %v2625_v55 }
 0x31e   : > { %1201 = vst.msk [vmem:[%s2023_s26 + $0x3a] sm:$0x1] %vm624_vm11, %v1181_v32  ;;  %1469 = vst.msk [vmem:[%s2023_s26 + $0x4e] sm:$0x1] %vm624_vm11, %v1453_v21 }
 0x320   : > { %v1275_v58 = vpop.permute.xlu0 %1274 }
 0x321   : > { %v1185_v52 = vpop.permute.xlu1 %1184  ;;  %1296 = vst.msk [vmem:[%s2023_s26 + $0x2d] sm:$0x1] %vm624_vm11, %v1275_v58 }
 0x322   : > { %1203 = vst.msk [vmem:[%s2023_s26 + $0x5a] sm:$0x1] %vm624_vm11, %v1185_v52 }
 0x324   : > { %v1279_v5 = vpop.permute.xlu0 %1278 }
 0x325   : > { %v1213_v23 = vpop.permute.xlu1 %1212  ;;  %1298 = vst.msk [vmem:[%s2023_s26 + $0x4d] sm:$0x1] %vm624_vm11, %v1279_v5 }
 0x326   : > { %1233 = vst.msk [vmem:[%s2023_s26 + $0x3b] sm:$0x1] %vm624_vm11, %v1213_v23 }
 0x328   : > { %v977_v33 = vpop.permute.xlu0 %976 }
 0x329   : > { %v1217_v25 = vpop.permute.xlu1 %1216  ;;  %v1006_v41 = vsel %vm1004_vm12, %v977_v33, %v979_v17 }
 0x32a   : > { %1235 = vst.msk [vmem:[%s2023_s26 + $0x5b] sm:$0x1] %vm624_vm11, %v1217_v25  ;;  %1022 = vst.msk [vmem:[%s2023_s26 + $0x17] sm:$0x1] %vm624_vm11, %v1006_v41 }
 0x32c   : > { %v981_v14 = vpop.permute.xlu0 %980 }
 0x32d   : > { %v1245_v42 = vpop.permute.xlu1 %1244  ;;  %v1007_v27 = vsel %vm1004_vm12, %v981_v14, %v983_v44 }
 0x32e   : > { %1265 = vst.msk [vmem:[%s2023_s26 + $0x3c] sm:$0x1] %vm624_vm11, %v1245_v42  ;;  %1023 = vst.msk [vmem:[%s2023_s26 + $0x27] sm:$0x1] %vm624_vm11, %v1007_v27 }
 0x330   : > { %v993_v46 = vpop.permute.xlu0 %992 }
 0x331   : > { %v1249_v61 = vpop.permute.xlu1 %1248  ;;  %v1010_v19 = vsel %vm1004_vm12, %v993_v46, %v995_v3 }
 0x332   : > { %1267 = vst.msk [vmem:[%s2023_s26 + $0x5c] sm:$0x1] %vm624_vm11, %v1249_v61  ;;  %1026 = vst.msk [vmem:[%s2023_s26 + $0x57] sm:$0x1] %vm624_vm11, %v1010_v19 }
 0x334   : > { %v997_v54 = vpop.permute.xlu0 %996 }
 0x335   : > { %v1424_v11 = vpop.permute.xlu1 %1423  ;;  %v1011_v0 = vsel %vm1004_vm12, %v997_v54, %v999_v6 }
 0x336   : > { %1027 = vst.msk [vmem:[%s2023_s26 + $0x67] sm:$0x1] %vm624_vm11, %v1011_v0 }
 0x338   : > { %v1123_v22 = vpop.permute.xlu0 %1122 }
 0x339   : > { %v1428_v2 = vpop.permute.xlu1 %1427  ;;  %1140 = vst.msk [vmem:[%s2023_s26 + $0x68] sm:$0x1] %vm624_vm11, %v1123_v22 }
 0x33c   : > { %v1155_v24 = vpop.permute.xlu0 %1154 }
 0x33d   : > { %v1440_v1 = vpop.permute.xlu1 %1439  ;;  %1172 = vst.msk [vmem:[%s2023_s26 + $0x69] sm:$0x1] %vm624_vm11, %v1155_v24 }
 0x340   : > { %v1187_v26 = vpop.permute.xlu0 %1186 }
 0x341   : > { %v1444_v59 = vpop.permute.xlu1 %1443  ;;  %1204 = vst.msk [vmem:[%s2023_s26 + $0x6a] sm:$0x1] %vm624_vm11, %v1187_v26 }
 0x344   : > { %v1219_v34 = vpop.permute.xlu0 %1218 }
 0x345   : > { %v1277_v43 = vpop.permute.xlu1 %1276  ;;  %1236 = vst.msk [vmem:[%s2023_s26 + $0x6b] sm:$0x1] %vm624_vm11, %v1219_v34 }
 0x346   : > { %1297 = vst.msk [vmem:[%s2023_s26 + $0x3d] sm:$0x1] %vm624_vm11, %v1277_v43 }
 0x348   : > { %v1251_v55 = vpop.permute.xlu0 %1250 }
 0x349   : > { %v1281_v62 = vpop.permute.xlu1 %1280  ;;  %1268 = vst.msk [vmem:[%s2023_s26 + $0x6c] sm:$0x1] %vm624_vm11, %v1251_v55 }
 0x34a   : > { %1299 = vst.msk [vmem:[%s2023_s26 + $0x5d] sm:$0x1] %vm624_vm11, %v1281_v62 }
 0x34c   : > { %v1422_v47 = vpop.permute.xlu0 %1421 }
 0x34d   : > { %v987_v39 = vpop.permute.xlu1 %986  ;;  %v1450_v48 = vsel %vm415_vm9, %v1422_v47, %v1424_v11 }
 0x34e   : > { %1466 = vst.msk [vmem:[%s2023_s26 + $0x1e] sm:$0x1] %vm624_vm11, %v1450_v48 }
 0x350   : > { %v1426_v4 = vpop.permute.xlu0 %1425 }
 0x351   : > { %v1003_v28 = vpop.permute.xlu1 %1002  ;;  %v1451_v49 = vsel %vm415_vm9, %v1426_v4, %v1428_v2 }
 0x352   : > { %1467 = vst.msk [vmem:[%s2023_s26 + $0x2e] sm:$0x1] %vm624_vm11, %v1451_v49 }
 0x354   : > { %v1438_v10 = vpop.permute.xlu0 %1437 }
 0x355   : > { %v1125_v7 = vpop.permute.xlu1 %1124  ;;  %v1454_v30 = vsel %vm415_vm9, %v1438_v10, %v1440_v1 }
 0x356   : > { %1141 = vst.msk [vmem:[%s2023_s26 + $0x78] sm:$0x1] %vm624_vm11, %v1125_v7  ;;  %1470 = vst.msk [vmem:[%s2023_s26 + $0x5e] sm:$0x1] %vm624_vm11, %v1454_v30 }
 0x358   : > { %v1442_v60 = vpop.permute.xlu0 %1441 }
 0x359   : > { %v1157_v29 = vpop.permute.xlu1 %1156  ;;  %v1455_v35 = vsel %vm415_vm9, %v1442_v60, %v1444_v59 }
 0x35a   : > { %1173 = vst.msk [vmem:[%s2023_s26 + $0x79] sm:$0x1] %vm624_vm11, %v1157_v29  ;;  %1471 = vst.msk [vmem:[%s2023_s26 + $0x6e] sm:$0x1] %vm624_vm11, %v1455_v35 }
 0x35c   : > { %v1283_v50 = vpop.permute.xlu0 %1282 }
 0x35d   : > { %v1189_v36 = vpop.permute.xlu1 %1188  ;;  %1300 = vst.msk [vmem:[%s2023_s26 + $0x6d] sm:$0x1] %vm624_vm11, %v1283_v50 }
 0x35e   : > { %1205 = vst.msk [vmem:[%s2023_s26 + $0x7a] sm:$0x1] %vm624_vm11, %v1189_v36 }
 0x360   : > { %v985_v53 = vpop.permute.xlu0 %984 }
 0x361   : > { %v1221_v37 = vpop.permute.xlu1 %1220  ;;  %v1008_v38 = vsel %vm1004_vm12, %v985_v53, %v987_v39 }
 0x362   : > { %1237 = vst.msk [vmem:[%s2023_s26 + $0x7b] sm:$0x1] %vm624_vm11, %v1221_v37  ;;  %1024 = vst.msk [vmem:[%s2023_s26 + $0x37] sm:$0x1] %vm624_vm11, %v1008_v38 }
 0x364   : > { %v1001_v9 = vpop.permute.xlu0 %1000 }
 0x365   : > { %v1253_v56 = vpop.permute.xlu1 %1252  ;;  %v1012_v17 = vsel %vm1004_vm12, %v1001_v9, %v1003_v28 }
 0x366   : > { %1269 = vst.msk [vmem:[%s2023_s26 + $0x7c] sm:$0x1] %vm624_vm11, %v1253_v56  ;;  %1028 = vst.msk [vmem:[%s2023_s26 + $0x77] sm:$0x1] %vm624_vm11, %v1012_v17 }
 0x368   : > { %v1430_v63 = vpop.permute.xlu0 %1429 }
 0x369   : > { %v1432_v44 = vpop.permute.xlu1 %1431 }
 0x36a   : > { %v1452_v16 = vsel %vm415_vm9, %v1430_v63, %v1432_v44 }
 0x36b   : > { %1468 = vst.msk [vmem:[%s2023_s26 + $0x3e] sm:$0x1] %vm624_vm11, %v1452_v16 }
 0x36c   : > { %v1446_v3 = vpop.permute.xlu0 %1445 }
 0x36d   : > { %v1448_v40 = vpop.permute.xlu1 %1447 }
 0x36e   : > { %v1456_v6 = vsel %vm415_vm9, %v1446_v3, %v1448_v40 }
 0x36f   : > { %1472 = vst.msk [vmem:[%s2023_s26 + $0x7e] sm:$0x1] %vm624_vm11, %v1456_v6 }
 0x370   : > { %v1567_v8 = vpop.permute.xlu0 %1566 }
 0x371   : > { %v1285_v51 = vpop.permute.xlu1 %1284  ;;  %1584 = vst.msk [vmem:[%s2023_s26 + $0x6f] sm:$0x1] %vm624_vm11, %v1567_v8 }
 0x372   : > { %1301 = vst.msk [vmem:[%s2023_s26 + $0x7d] sm:$0x1] %vm624_vm11, %v1285_v51 }
 0x375   : > { %v1569_v57 = vpop.permute.xlu1 %1568 }
 0x376   : > { %1585 = vst.msk [vmem:[%s2023_s26 + $0x7f] sm:$0x1] %vm624_vm11, %v1569_v57 }
 0x377   : > { %1785 = shalt.err (!%p1782_p3)
}
 0x378   : > { %s1786_s20 = scalar_lea.hbm %s2824_s27, 2048  ;;  %s1790_s7 = scalar_lea.hbm %s2875_s3, 4096 }
 0x379   : > { %p1787_p4 = scmp.ne.s32.totalorder %s2824_s27, %s1786_s20  ;;  %p1791_p9 = scmp.lt.s32.totalorder %s2824_s27, %s2875_s3 }
 0x37a   : > { %p1792_p10 = scmp.lt.s32.totalorder %s1790_s7, %s1786_s20 }
 0x37b   : > { %p1788_p7 = pnand %p1787_p4, %p1929_p5 }
 0x37c   : > { %p1793_p11 = por %p1792_p10, %p1791_p9 }
 0x37d   : > { %p1789_p8 = pneg %p1788_p7 }
 0x37f   : > { %p1794_p12 = pnand %p1793_p11, %p1789_p8 }
 0x381   : > { %1797 = shalt.err (!%p1794_p12)
}
 0x382   : > { %s1869_s11 = smov 128   ;;  %s1870_s17 = smov 8  }
 0x383   : > { %1687 = dma.vmem_to_hbm [thread:$0]  (%p1929_p5), %s2826_s9, 2048, %s2824_s27, %s2832_s16, %s1869_s11, %s1869_s11, %s1870_s17  }
 0x384 PF: > { %p1693_p13 = scmp.ge.s32.totalorder %s1832_s15, 2  ;;  %s1615_s19 = sand.u32 1, %s1820_s12  }
 0x385   : > { %s1616_s6 = scalar_lea.sflag [#allocation3], %s1615_s19 }
 0x386   : > { %p1690_p0 = pnand %p1693_p13, %p1933_p6 }
 0x388   : > { %p1691_p1 = pneg %p1690_p0 }
 0x38a   : > { %1815 = dma.done.wait (%p1691_p1), %s1616_s6, 2048  }
 0x38b   : > { %1817 = vsyncadd (%p1691_p1), %s1616_s6, 4294965248  ;;  %p13_p2 = scmp.ge.s32.totalorder %s1916_s18, 4   ;;  %s2885_s12 = smov %s1824_s13 }
 0x38c   : > { %s2886_s13 = smov %s1828_s14  ;;  %s2887_s14 = smov %s1927_s21 }
 0x38d   : > { %s2888_s15 = smov %s1916_s18  ;;  %15 = sbr.rel (!%p13_p2) target bundleno = 3 (0x3), region = 67 }
 0x392   :  { %1621 = vsyncpa [#allocation3], 1 }
 0x393   :  { %1623 = vsyncpa [#allocation3 + $0x1], 1 }

</bundles_post_ra>
